<compile_context>
chip_gen: v7x
topology: tpu7x:2x2x1
jax: 0.10.0
libtpu: 0.0.40
codegen_flags: <defaults>
</compile_context>

<pallas_src>
import functools

import jax
import jax.numpy as jnp
from jax import lax
from jax.experimental import pallas as pl
from jax.experimental.pallas import tpu as pltpu


def _esc_loss_kernel(train_ref, test_ref, valid_ref, fake_ref, data_ref,
                     band_h_ref, band_w_ref, out_ref,
                     acc_hole, acc_tvh, acc_tvv,
                     *, inv_hole, inv_tvh, inv_tvv):
    k = pl.program_id(1)                  # chunk axis ("arbitrary", accumulated)

    @pl.when(k == 0)
    def _init():
        acc_hole[...] = jnp.zeros_like(acc_hole)
        acc_tvh[...] = jnp.zeros_like(acc_tvh)
        acc_tvv[...] = jnp.zeros_like(acc_tvv)

    f32 = jnp.float32
    trm = train_ref[...].astype(f32)      # (nb, c, h, w)
    tsm = test_ref[...].astype(f32)
    vm = valid_ref[...].astype(f32)
    fk = fake_ref[...].astype(f32)
    dt = data_ref[...].astype(f32)
    nb, c, h, w = trm.shape

    # ---- simplified elementwise algebra ----
    #   q = valid*(1-test);  output - gt = (fake - data)*q
    #   output_comp = fake + q*(1-train)*(data - fake)
    q = vm * (1.0 - tsm)
    diff = (fk - dt) * (q * trm)
    hole_p = jnp.sum(jnp.sum(diff * diff, axis=1), axis=0)            # (h, w)
    acc_hole[...] = acc_hole[...] + hole_p

    img = fk + (q * (1.0 - trm)) * (dt - fk)                          # (nb,c,h,w)

    # ---- TV mask: dilate/erode of binarized valid*(train+test) ----
    m = jnp.where(vm * (trm + tsm) != 0.0, 1.0, 0.0)
    s_m = jnp.sum(m, axis=1)                                          # (nb, h, w)
    s_inv = float(c) - s_m                                            # sum_c(1-m)

    band_h = band_h_ref[...]              # (nb*h, nb*h) block-diagonal tri-band
    band_w = band_w_ref[...]              # (w, w) tri-band

    def box3x3(x):                        # zero-padded per-image 3x3 box sum
        x2 = x.reshape(nb * h, w)
        t1 = jnp.dot(band_h, x2, preferred_element_type=f32)
        return jnp.dot(t1, band_w, preferred_element_type=f32)

    dil = jnp.where(box3x3(s_inv) != 0.0, 1.0, 0.0)
    ero = jnp.where(box3x3(s_m) != 0.0, 1.0, 0.0)
    tvmask = (dil - (1.0 - ero)).reshape(nb, h, w)

    # ---- TV numerators: |spatial diff| summed over channels, then masked ----
    dh = jnp.sum(jnp.abs(img[:, :, :, :-1] - img[:, :, :, 1:]), axis=1)   # (nb,h,w-1)
    acc_tvh[...] = acc_tvh[...] + jnp.sum(dh * tvmask[:, :, :w - 1], axis=0)
    dv = jnp.sum(jnp.abs(img[:, :, :-1, :] - img[:, :, 1:, :]), axis=1)   # (nb,h-1,w)
    acc_tvv[...] = acc_tvv[...] + jnp.sum(dv * tvmask[:, :h - 1, :], axis=0)

    @pl.when(k == pl.num_programs(1) - 1)
    def _finalize():
        def red(x2d):                     # (R, C) -> (1, 1), done once per shard
            col = jnp.sum(x2d, axis=1, keepdims=True)
            return jnp.sum(col, axis=0, keepdims=True)

        part = (red(acc_hole[...]) * inv_hole
                + 0.1 * red(acc_tvh[...]) * inv_tvh
                + 0.1 * red(acc_tvv[...]) * inv_tvv)
        out_ref[...] = jnp.broadcast_to(part, out_ref.shape)


def _tri_band(size, block=None, dtype=jnp.float32):
    """|i-j| <= 1 band matrix; optionally block-diagonal over blocks of `block`."""
    r = lax.broadcasted_iota(jnp.int32, (size, size), 0)
    c = lax.broadcasted_iota(jnp.int32, (size, size), 1)
    band = jnp.abs(r - c) <= 1
    if block is not None:
        band = band & ((r // block) == (c // block))
    return band.astype(dtype)


@jax.jit
def esc_loss(train_mask, test_mask, valid_mask, fake, data):
    b, t, c, h, w = data.shape
    n = b * t
    data_r = data.reshape(n, c, h, w)
    valid_r = valid_mask.reshape(n, c, h, w)
    test_r = test_mask.reshape(n, c, h, w)
    train_r = train_mask.reshape(n, c, h, w)
    fake_r = fake.reshape(n, c, h, w)

    # ---- tiling: as many images per grid step as comfortably fit in VMEM ----
    itemsize = max(jnp.dtype(x.dtype).itemsize
                   for x in (train_r, test_r, valid_r, fake_r, data_r))
    per_img = 5 * 2 * c * h * w * itemsize          # 5 inputs, double-buffered
    max_nb = max(1, (8 * 1024 * 1024) // per_img)   # ~8 MiB input-block budget
    max_nb = min(max_nb, max(1, 512 // h))          # keep block-diag band small
    if h % 8 != 0:
        max_nb = 1                                  # keep in-kernel reshape a no-op
    shards = 2 if (n % 2 == 0 and n >= 2) else 1    # megacore split (v7x)
    per_shard = n // shards
    nb = 1
    for d in range(1, per_shard + 1):
        if per_shard % d == 0 and d <= max_nb:
            nb = d
    chunks = per_shard // nb

    # ---- grid-invariant band matrices (hoisted; stay VMEM-resident) ----
    band_h = _tri_band(nb * h, block=h)             # block-diag over nb images
    band_w = _tri_band(w)

    kernel = functools.partial(
        _esc_loss_kernel,
        inv_hole=1.0 / float(n * c * h * w),
        inv_tvh=1.0 / float(n * c * h * (w - 1)),
        inv_tvv=1.0 / float(n * c * (h - 1) * w),
    )
    img_spec = pl.BlockSpec((nb, c, h, w),
                            lambda s, k: (s * chunks + k, 0, 0, 0))
    bh_spec = pl.BlockSpec((nb * h, nb * h), lambda s, k: (0, 0))
    bw_spec = pl.BlockSpec((w, w), lambda s, k: (0, 0))

    out = pl.pallas_call(
        kernel,
        out_shape=jax.ShapeDtypeStruct((shards, 8, 128), jnp.float32),
        grid_spec=pltpu.PrefetchScalarGridSpec(
            num_scalar_prefetch=0,
            grid=(shards, chunks),
            in_specs=[img_spec] * 5 + [bh_spec, bw_spec],
            out_specs=pl.BlockSpec((1, 8, 128), lambda s, k: (s, 0, 0)),
            scratch_shapes=[pltpu.VMEM((h, w), jnp.float32),
                            pltpu.VMEM((h, w - 1), jnp.float32),
                            pltpu.VMEM((h - 1, w), jnp.float32)],
        ),
        compiler_params=pltpu.CompilerParams(
            dimension_semantics=("parallel", "arbitrary"),
            vmem_limit_bytes=32 * 1024 * 1024),
    )(train_r, test_r, valid_r, fake_r, data_r, band_h, band_w)
    return jnp.sum(out[:, 0, 0])


def esc_loss_ref(train_mask, test_mask, valid_mask, fake, data):
    """Pure-JAX reference matching the PyTorch forward exactly."""
    b, t, c, h, w = data.shape
    n = b * t
    data = data.reshape(n, c, h, w)
    valid = valid_mask.reshape(n, c, h, w)
    test = test_mask.reshape(n, c, h, w)

    output = fake * valid * (1 - test)
    gt = data * valid * (1 - test)
    output_comp = (output * train_mask + gt * (1 - train_mask)
                   + fake * (1 - valid) + fake * test
                   - fake * test * (1 - valid))
    hole = jnp.mean(((output - gt) * train_mask) ** 2)

    m = valid * (train_mask + test)
    m = jnp.where(m != 0, 1.0, 0.0)

    def box3x3(x):  # x: (n, H, W), zero-padded 3x3 box sum
        xp = jnp.pad(x, ((0, 0), (1, 1), (1, 1)))
        return sum(xp[:, i:i + h, j:j + w] for i in range(3) for j in range(3))

    dil = jnp.where(box3x3(jnp.sum(1 - m, axis=1)) != 0, 1.0, 0.0)
    ero = jnp.where(box3x3(jnp.sum(m, axis=1)) != 0, 1.0, 0.0)
    tvmask = (dil - (1.0 - ero))[:, None]     # (n, 1, H, W)

    img = output_comp
    tvh = jnp.mean(jnp.abs(img[:, :, :, :-1] - img[:, :, :, 1:]) * tvmask[:, :, :, :-1])
    tvv = jnp.mean(jnp.abs(img[:, :, :-1, :] - img[:, :, 1:, :]) * tvmask[:, :, :-1, :])
    return hole + 0.1 * (tvh + tvv)


if __name__ == "__main__":
    b, t, c, h, w = 2, 2, 3, 16, 16
    n = b * t
    key = jax.random.PRNGKey(0)
    k1, k2, k3, k4, k5 = jax.random.split(key, 5)

    train_mask = jax.random.bernoulli(k1, 0.5, (n, c, h, w)).astype(jnp.float32)
    test_mask = jax.random.bernoulli(k2, 0.3, (b, t, c, h, w)).astype(jnp.float32)
    valid_mask = jax.random.bernoulli(k3, 0.7, (b, t, c, h, w)).astype(jnp.float32)
    fake = jax.random.normal(k4, (n, c, h, w), jnp.float32)
    data = jax.random.normal(k5, (b, t, c, h, w), jnp.float32)

    loss = esc_loss(train_mask, test_mask, valid_mask, fake, data)
    loss = jax.block_until_ready(loss)

    ref = esc_loss_ref(train_mask, test_mask, valid_mask, fake, data)
    assert jnp.allclose(loss, ref, rtol=1e-4, atol=1e-5), (loss, ref)
    print("KERNEL_OK")
</pallas_src>

<mosaic_0001>
module attributes {stable_mosaic.version = 11 : i64} {
  func.func @_esc_loss_kernel(%arg0: i32, %arg1: i32, %arg2: memref<2x3x16x16xf32, #tpu.memory_space<vmem>>, %arg3: memref<2x3x16x16xf32, #tpu.memory_space<vmem>>, %arg4: memref<2x3x16x16xf32, #tpu.memory_space<vmem>>, %arg5: memref<2x3x16x16xf32, #tpu.memory_space<vmem>>, %arg6: memref<2x3x16x16xf32, #tpu.memory_space<vmem>>, %arg7: memref<32x32xf32, #tpu.memory_space<vmem>>, %arg8: memref<16x16xf32, #tpu.memory_space<vmem>>, %arg9: memref<1x8x128xf32, #tpu.memory_space<vmem>>, %arg10: memref<16x16xf32, #tpu.memory_space<vmem>>, %arg11: memref<16x15xf32, #tpu.memory_space<vmem>>, %arg12: memref<15x16xf32, #tpu.memory_space<vmem>>) attributes {dimension_semantics = [#tpu.dimension_semantics<parallel>, #tpu.dimension_semantics<arbitrary>], iteration_bounds = array<i64: 2, 1>, scalar_prefetch = 0 : i64, scratch_operands = 3 : i64, tpu.core_type = #tpu.core_type<tc>, window_params = [{transform_indices = @transform_0, window_bounds = array<i64: 2, 3, 16, 16>}, {transform_indices = @transform_1, window_bounds = array<i64: 2, 3, 16, 16>}, {transform_indices = @transform_2, window_bounds = array<i64: 2, 3, 16, 16>}, {transform_indices = @transform_3, window_bounds = array<i64: 2, 3, 16, 16>}, {transform_indices = @transform_4, window_bounds = array<i64: 2, 3, 16, 16>}, {pipeline_mode = #tpu.pipeline_mode<synchronous>, transform_indices = @transform_5, window_bounds = array<i64: 32, 32>}, {pipeline_mode = #tpu.pipeline_mode<synchronous>, transform_indices = @transform_6, window_bounds = array<i64: 16, 16>}, {transform_indices = @transform_7, window_bounds = array<i64: 1, 8, 128>}]} {
    %c0_i32 = arith.constant 0 : i32
    %0 = arith.cmpi eq, %arg1, %c0_i32 : i32
    %1 = arith.extui %0 : i1 to i32
    %c0_i32_0 = arith.constant 0 : i32
    %2 = arith.cmpi ne, %1, %c0_i32_0 : i32
    scf.if %2 {
      %cst_61 = arith.constant 0.000000e+00 : f32
      %83 = vector.broadcast %cst_61 : f32 to vector<16x16xf32>
      %c0_62 = arith.constant 0 : index
      %c0_63 = arith.constant 0 : index
      %84 = vector.load %arg10[%c0_62, %c0_63] : memref<16x16xf32, #tpu.memory_space<vmem>>, vector<16x16xf32>
      tpu.vector_store %arg10[%c0_62, %c0_63], %83 {strides = array<i32>} : memref<16x16xf32, #tpu.memory_space<vmem>>, vector<16x16xf32>,
      %cst_64 = arith.constant 0.000000e+00 : f32
      %85 = vector.broadcast %cst_64 : f32 to vector<16x15xf32>
      %c0_65 = arith.constant 0 : index
      %c0_66 = arith.constant 0 : index
      %86 = vector.load %arg11[%c0_65, %c0_66] : memref<16x15xf32, #tpu.memory_space<vmem>>, vector<16x15xf32>
      tpu.vector_store %arg11[%c0_65, %c0_66], %85 {strides = array<i32>} : memref<16x15xf32, #tpu.memory_space<vmem>>, vector<16x15xf32>,
      %cst_67 = arith.constant 0.000000e+00 : f32
      %87 = vector.broadcast %cst_67 : f32 to vector<15x16xf32>
      %c0_68 = arith.constant 0 : index
      %c0_69 = arith.constant 0 : index
      %88 = vector.load %arg12[%c0_68, %c0_69] : memref<15x16xf32, #tpu.memory_space<vmem>>, vector<15x16xf32>
      tpu.vector_store %arg12[%c0_68, %c0_69], %87 {strides = array<i32>} : memref<15x16xf32, #tpu.memory_space<vmem>>, vector<15x16xf32>,
    } else {
    }
    %c0 = arith.constant 0 : index
    %c0_1 = arith.constant 0 : index
    %c0_2 = arith.constant 0 : index
    %c0_3 = arith.constant 0 : index
    %3 = vector.load %arg2[%c0, %c0_1, %c0_2, %c0_3] : memref<2x3x16x16xf32, #tpu.memory_space<vmem>>, vector<2x3x16x16xf32>
    %c0_4 = arith.constant 0 : index
    %c0_5 = arith.constant 0 : index
    %c0_6 = arith.constant 0 : index
    %c0_7 = arith.constant 0 : index
    %4 = vector.load %arg3[%c0_4, %c0_5, %c0_6, %c0_7] : memref<2x3x16x16xf32, #tpu.memory_space<vmem>>, vector<2x3x16x16xf32>
    %c0_8 = arith.constant 0 : index
    %c0_9 = arith.constant 0 : index
    %c0_10 = arith.constant 0 : index
    %c0_11 = arith.constant 0 : index
    %5 = vector.load %arg4[%c0_8, %c0_9, %c0_10, %c0_11] : memref<2x3x16x16xf32, #tpu.memory_space<vmem>>, vector<2x3x16x16xf32>
    %c0_12 = arith.constant 0 : index
    %c0_13 = arith.constant 0 : index
    %c0_14 = arith.constant 0 : index
    %c0_15 = arith.constant 0 : index
    %6 = vector.load %arg5[%c0_12, %c0_13, %c0_14, %c0_15] : memref<2x3x16x16xf32, #tpu.memory_space<vmem>>, vector<2x3x16x16xf32>
    %c0_16 = arith.constant 0 : index
    %c0_17 = arith.constant 0 : index
    %c0_18 = arith.constant 0 : index
    %c0_19 = arith.constant 0 : index
    %7 = vector.load %arg6[%c0_16, %c0_17, %c0_18, %c0_19] : memref<2x3x16x16xf32, #tpu.memory_space<vmem>>, vector<2x3x16x16xf32>
    %cst = arith.constant 1.000000e+00 : f32
    %8 = vector.broadcast %cst : f32 to vector<2x3x16x16xf32>
    %9 = arith.subf %8, %4 : vector<2x3x16x16xf32>
    %10 = arith.mulf %5, %9 : vector<2x3x16x16xf32>
    %11 = arith.subf %6, %7 : vector<2x3x16x16xf32>
    %12 = arith.mulf %10, %3 : vector<2x3x16x16xf32>
    %13 = arith.mulf %11, %12 : vector<2x3x16x16xf32>
    %14 = arith.mulf %13, %13 : vector<2x3x16x16xf32>
    %cst_20 = arith.constant dense<0.000000e+00> : vector<2x16x16xf32>
    %15 = vector.multi_reduction <add>, %14, %cst_20 [1] : vector<2x3x16x16xf32> to vector<2x16x16xf32>
    %cst_21 = arith.constant dense<0.000000e+00> : vector<16x16xf32>
    %16 = vector.multi_reduction <add>, %15, %cst_21 [0] : vector<2x16x16xf32> to vector<16x16xf32>
    %c0_22 = arith.constant 0 : index
    %c0_23 = arith.constant 0 : index
    %17 = vector.load %arg10[%c0_22, %c0_23] : memref<16x16xf32, #tpu.memory_space<vmem>>, vector<16x16xf32>
    %18 = arith.addf %17, %16 : vector<16x16xf32>
    %c0_24 = arith.constant 0 : index
    %c0_25 = arith.constant 0 : index
    %19 = vector.load %arg10[%c0_24, %c0_25] : memref<16x16xf32, #tpu.memory_space<vmem>>, vector<16x16xf32>
    tpu.vector_store %arg10[%c0_24, %c0_25], %18 {strides = array<i32>} : memref<16x16xf32, #tpu.memory_space<vmem>>, vector<16x16xf32>,
    %cst_26 = arith.constant 1.000000e+00 : f32
    %20 = vector.broadcast %cst_26 : f32 to vector<2x3x16x16xf32>
    %21 = arith.subf %20, %3 : vector<2x3x16x16xf32>
    %22 = arith.mulf %10, %21 : vector<2x3x16x16xf32>
    %23 = arith.subf %7, %6 : vector<2x3x16x16xf32>
    %24 = arith.mulf %22, %23 : vector<2x3x16x16xf32>
    %25 = arith.addf %6, %24 : vector<2x3x16x16xf32>
    %26 = arith.addf %3, %4 : vector<2x3x16x16xf32>
    %27 = arith.mulf %5, %26 : vector<2x3x16x16xf32>
    %cst_27 = arith.constant 0.000000e+00 : f32
    %28 = vector.broadcast %cst_27 : f32 to vector<2x3x16x16xf32>
    %29 = arith.cmpf one, %27, %28 : vector<2x3x16x16xf32>
    %cst_28 = arith.constant 1.000000e+00 : f32
    %cst_29 = arith.constant 0.000000e+00 : f32
    %30 = vector.broadcast %cst_28 : f32 to vector<2x3x16x16xf32>
    %31 = vector.broadcast %cst_29 : f32 to vector<2x3x16x16xf32>
    %32 = arith.select %29, %30, %31 : vector<2x3x16x16xi1>, vector<2x3x16x16xf32>
    %cst_30 = arith.constant dense<0.000000e+00> : vector<2x16x16xf32>
    %33 = vector.multi_reduction <add>, %32, %cst_30 [1] : vector<2x3x16x16xf32> to vector<2x16x16xf32>
    %cst_31 = arith.constant 3.000000e+00 : f32
    %34 = vector.broadcast %cst_31 : f32 to vector<2x16x16xf32>
    %35 = arith.subf %34, %33 : vector<2x16x16xf32>
    %c0_32 = arith.constant 0 : index
    %c0_33 = arith.constant 0 : index
    %36 = vector.load %arg7[%c0_32, %c0_33] : memref<32x32xf32, #tpu.memory_space<vmem>>, vector<32x32xf32>
    %c0_34 = arith.constant 0 : index
    %c0_35 = arith.constant 0 : index
    %37 = vector.load %arg8[%c0_34, %c0_35] : memref<16x16xf32, #tpu.memory_space<vmem>>, vector<16x16xf32>
    %38 = vector.shape_cast %35 : vector<2x16x16xf32> to vector<32x16xf32>
    %cst_36 = arith.constant dense<0.000000e+00> : vector<32x16xf32>
    %39 = tpu.matmul %36, %38, %cst_36 {dimension_numbers = #tpu.dot_dimension_numbers<[1], [0], [0], [1], [0, 0, 1, 1], [], []>} : vector<32x32xf32>, vector<32x16xf32>, vector<32x16xf32> -> vector<32x16xf32>
    %cst_37 = arith.constant dense<0.000000e+00> : vector<32x16xf32>
    %40 = tpu.matmul %39, %37, %cst_37 {dimension_numbers = #tpu.dot_dimension_numbers<[1], [0], [0], [1], [0, 0, 1, 1], [], []>} : vector<32x16xf32>, vector<16x16xf32>, vector<32x16xf32> -> vector<32x16xf32>
    %cst_38 = arith.constant 0.000000e+00 : f32
    %41 = vector.broadcast %cst_38 : f32 to vector<32x16xf32>
    %42 = arith.cmpf one, %40, %41 : vector<32x16xf32>
    %cst_39 = arith.constant 1.000000e+00 : f32
    %cst_40 = arith.constant 0.000000e+00 : f32
    %43 = vector.broadcast %cst_39 : f32 to vector<32x16xf32>
    %44 = vector.broadcast %cst_40 : f32 to vector<32x16xf32>
    %45 = arith.select %42, %43, %44 : vector<32x16xi1>, vector<32x16xf32>
    %46 = vector.shape_cast %33 : vector<2x16x16xf32> to vector<32x16xf32>
    %cst_41 = arith.constant dense<0.000000e+00> : vector<32x16xf32>
    %47 = tpu.matmul %36, %46, %cst_41 {dimension_numbers = #tpu.dot_dimension_numbers<[1], [0], [0], [1], [0, 0, 1, 1], [], []>} : vector<32x32xf32>, vector<32x16xf32>, vector<32x16xf32> -> vector<32x16xf32>
    %cst_42 = arith.constant dense<0.000000e+00> : vector<32x16xf32>
    %48 = tpu.matmul %47, %37, %cst_42 {dimension_numbers = #tpu.dot_dimension_numbers<[1], [0], [0], [1], [0, 0, 1, 1], [], []>} : vector<32x16xf32>, vector<16x16xf32>, vector<32x16xf32> -> vector<32x16xf32>
    %cst_43 = arith.constant 0.000000e+00 : f32
    %49 = vector.broadcast %cst_43 : f32 to vector<32x16xf32>
    %50 = arith.cmpf one, %48, %49 : vector<32x16xf32>
    %cst_44 = arith.constant 1.000000e+00 : f32
    %cst_45 = arith.constant 0.000000e+00 : f32
    %51 = vector.broadcast %cst_44 : f32 to vector<32x16xf32>
    %52 = vector.broadcast %cst_45 : f32 to vector<32x16xf32>
    %53 = arith.select %50, %51, %52 : vector<32x16xi1>, vector<32x16xf32>
    %cst_46 = arith.constant 1.000000e+00 : f32
    %54 = vector.broadcast %cst_46 : f32 to vector<32x16xf32>
    %55 = arith.subf %54, %53 : vector<32x16xf32>
    %56 = arith.subf %45, %55 : vector<32x16xf32>
    %57 = vector.shape_cast %56 : vector<32x16xf32> to vector<2x16x16xf32>
    %58 = vector.extract_strided_slice %25 {offsets = [0, 0, 0, 0], sizes = [2, 3, 16, 15], strides = [1, 1, 1, 1]} : vector<2x3x16x16xf32> to vector<2x3x16x15xf32>
    %59 = vector.extract_strided_slice %25 {offsets = [0, 0, 0, 1], sizes = [2, 3, 16, 15], strides = [1, 1, 1, 1]} : vector<2x3x16x16xf32> to vector<2x3x16x15xf32>
    %60 = arith.subf %58, %59 : vector<2x3x16x15xf32>
    %61 = math.absf %60 : vector<2x3x16x15xf32>
    %cst_47 = arith.constant dense<0.000000e+00> : vector<2x16x15xf32>
    %62 = vector.multi_reduction <add>, %61, %cst_47 [1] : vector<2x3x16x15xf32> to vector<2x16x15xf32>
    %c0_48 = arith.constant 0 : index
    %c0_49 = arith.constant 0 : index
    %63 = vector.load %arg11[%c0_48, %c0_49] : memref<16x15xf32, #tpu.memory_space<vmem>>, vector<16x15xf32>
    %64 = vector.extract_strided_slice %57 {offsets = [0, 0, 0], sizes = [2, 16, 15], strides = [1, 1, 1]} : vector<2x16x16xf32> to vector<2x16x15xf32>
    %65 = arith.mulf %62, %64 : vector<2x16x15xf32>
    %cst_50 = arith.constant dense<0.000000e+00> : vector<16x15xf32>
    %66 = vector.multi_reduction <add>, %65, %cst_50 [0] : vector<2x16x15xf32> to vector<16x15xf32>
    %67 = arith.addf %63, %66 : vector<16x15xf32>
    %c0_51 = arith.constant 0 : index
    %c0_52 = arith.constant 0 : index
    %68 = vector.load %arg11[%c0_51, %c0_52] : memref<16x15xf32, #tpu.memory_space<vmem>>, vector<16x15xf32>
    tpu.vector_store %arg11[%c0_51, %c0_52], %67 {strides = array<i32>} : memref<16x15xf32, #tpu.memory_space<vmem>>, vector<16x15xf32>,
    %69 = vector.extract_strided_slice %25 {offsets = [0, 0, 0, 0], sizes = [2, 3, 15, 16], strides = [1, 1, 1, 1]} : vector<2x3x16x16xf32> to vector<2x3x15x16xf32>
    %70 = vector.extract_strided_slice %25 {offsets = [0, 0, 1, 0], sizes = [2, 3, 15, 16], strides = [1, 1, 1, 1]} : vector<2x3x16x16xf32> to vector<2x3x15x16xf32>
    %71 = arith.subf %69, %70 : vector<2x3x15x16xf32>
    %72 = math.absf %71 : vector<2x3x15x16xf32>
    %cst_53 = arith.constant dense<0.000000e+00> : vector<2x15x16xf32>
    %73 = vector.multi_reduction <add>, %72, %cst_53 [1] : vector<2x3x15x16xf32> to vector<2x15x16xf32>
    %c0_54 = arith.constant 0 : index
    %c0_55 = arith.constant 0 : index
    %74 = vector.load %arg12[%c0_54, %c0_55] : memref<15x16xf32, #tpu.memory_space<vmem>>, vector<15x16xf32>
    %75 = vector.extract_strided_slice %57 {offsets = [0, 0, 0], sizes = [2, 15, 16], strides = [1, 1, 1]} : vector<2x16x16xf32> to vector<2x15x16xf32>
    %76 = arith.mulf %73, %75 : vector<2x15x16xf32>
    %cst_56 = arith.constant dense<0.000000e+00> : vector<15x16xf32>
    %77 = vector.multi_reduction <add>, %76, %cst_56 [0] : vector<2x15x16xf32> to vector<15x16xf32>
    %78 = arith.addf %74, %77 : vector<15x16xf32>
    %c0_57 = arith.constant 0 : index
    %c0_58 = arith.constant 0 : index
    %79 = vector.load %arg12[%c0_57, %c0_58] : memref<15x16xf32, #tpu.memory_space<vmem>>, vector<15x16xf32>
    tpu.vector_store %arg12[%c0_57, %c0_58], %78 {strides = array<i32>} : memref<15x16xf32, #tpu.memory_space<vmem>>, vector<15x16xf32>,
    %c0_i32_59 = arith.constant 0 : i32
    %80 = arith.cmpi eq, %arg1, %c0_i32_59 : i32
    %81 = arith.extui %80 : i1 to i32
    %c0_i32_60 = arith.constant 0 : i32
    %82 = arith.cmpi ne, %81, %c0_i32_60 : i32
    scf.if %82 {
      %c0_61 = arith.constant 0 : index
      %c0_62 = arith.constant 0 : index
      %83 = vector.load %arg10[%c0_61, %c0_62] : memref<16x16xf32, #tpu.memory_space<vmem>>, vector<16x16xf32>
      %cst_63 = arith.constant dense<0.000000e+00> : vector<16xf32>
      %84 = vector.multi_reduction <add>, %83, %cst_63 [1] : vector<16x16xf32> to vector<16xf32>
      %85 = vector.shape_cast %84 : vector<16xf32> to vector<16x1xf32>
      %cst_64 = arith.constant dense<0.000000e+00> : vector<1xf32>
      %86 = vector.multi_reduction <add>, %85, %cst_64 [0] : vector<16x1xf32> to vector<1xf32>
      %87 = vector.shape_cast %86 : vector<1xf32> to vector<1x1xf32>
      %cst_65 = arith.constant 3.25520843E-4 : f32
      %88 = vector.broadcast %cst_65 : f32 to vector<1x1xf32>
      %89 = arith.mulf %87, %88 : vector<1x1xf32>
      %c0_66 = arith.constant 0 : index
      %c0_67 = arith.constant 0 : index
      %90 = vector.load %arg11[%c0_66, %c0_67] : memref<16x15xf32, #tpu.memory_space<vmem>>, vector<16x15xf32>
      %cst_68 = arith.constant dense<0.000000e+00> : vector<16xf32>
      %91 = vector.multi_reduction <add>, %90, %cst_68 [1] : vector<16x15xf32> to vector<16xf32>
      %92 = vector.shape_cast %91 : vector<16xf32> to vector<16x1xf32>
      %cst_69 = arith.constant dense<0.000000e+00> : vector<1xf32>
      %93 = vector.multi_reduction <add>, %92, %cst_69 [0] : vector<16x1xf32> to vector<1xf32>
      %94 = vector.shape_cast %93 : vector<1xf32> to vector<1x1xf32>
      %cst_70 = arith.constant 1.000000e-01 : f32
      %95 = vector.broadcast %cst_70 : f32 to vector<1x1xf32>
      %96 = arith.mulf %95, %94 : vector<1x1xf32>
      %cst_71 = arith.constant 3.47222231E-4 : f32
      %97 = vector.broadcast %cst_71 : f32 to vector<1x1xf32>
      %98 = arith.mulf %96, %97 : vector<1x1xf32>
      %99 = arith.addf %89, %98 : vector<1x1xf32>
      %c0_72 = arith.constant 0 : index
      %c0_73 = arith.constant 0 : index
      %100 = vector.load %arg12[%c0_72, %c0_73] : memref<15x16xf32, #tpu.memory_space<vmem>>, vector<15x16xf32>
      %cst_74 = arith.constant dense<0.000000e+00> : vector<15xf32>
      %101 = vector.multi_reduction <add>, %100, %cst_74 [1] : vector<15x16xf32> to vector<15xf32>
      %102 = vector.shape_cast %101 : vector<15xf32> to vector<15x1xf32>
      %cst_75 = arith.constant dense<0.000000e+00> : vector<1xf32>
      %103 = vector.multi_reduction <add>, %102, %cst_75 [0] : vector<15x1xf32> to vector<1xf32>
      %104 = vector.shape_cast %103 : vector<1xf32> to vector<1x1xf32>
      %cst_76 = arith.constant 1.000000e-01 : f32
      %105 = vector.broadcast %cst_76 : f32 to vector<1x1xf32>
      %106 = arith.mulf %105, %104 : vector<1x1xf32>
      %cst_77 = arith.constant 3.47222231E-4 : f32
      %107 = vector.broadcast %cst_77 : f32 to vector<1x1xf32>
      %108 = arith.mulf %106, %107 : vector<1x1xf32>
      %109 = arith.addf %99, %108 : vector<1x1xf32>
      %110 = vector.shape_cast %109 : vector<1x1xf32> to vector<1x1x1xf32>
      %111 = vector.broadcast %110 : vector<1x1x1xf32> to vector<1x8x128xf32>
      %c0_78 = arith.constant 0 : index
      %c0_79 = arith.constant 0 : index
      %c0_80 = arith.constant 0 : index
      %112 = vector.load %arg9[%c0_78, %c0_79, %c0_80] : memref<1x8x128xf32, #tpu.memory_space<vmem>>, vector<1x8x128xf32>
      tpu.vector_store %arg9[%c0_78, %c0_79, %c0_80], %111 {strides = array<i32>} : memref<1x8x128xf32, #tpu.memory_space<vmem>>, vector<1x8x128xf32>,
    } else {
    }
    return
  }
  func.func @transform_0(%arg0: i32, %arg1: i32) -> (i32, i32, i32, i32) {
    %c1_i32 = arith.constant 1 : i32
    %0 = arith.muli %arg0, %c1_i32 : i32
    %1 = arith.addi %0, %arg1 : i32
    %c0_i32 = arith.constant 0 : i32
    %c0_i32_0 = arith.constant 0 : i32
    %c0_i32_1 = arith.constant 0 : i32
    %c0_i32_2 = arith.constant 0 : i32
    return %1, %c0_i32, %c0_i32_0, %c0_i32_1 : i32, i32, i32, i32
  }
  func.func @transform_1(%arg0: i32, %arg1: i32) -> (i32, i32, i32, i32) {
    %c1_i32 = arith.constant 1 : i32
    %0 = arith.muli %arg0, %c1_i32 : i32
    %1 = arith.addi %0, %arg1 : i32
    %c0_i32 = arith.constant 0 : i32
    %c0_i32_0 = arith.constant 0 : i32
    %c0_i32_1 = arith.constant 0 : i32
    %c0_i32_2 = arith.constant 0 : i32
    return %1, %c0_i32, %c0_i32_0, %c0_i32_1 : i32, i32, i32, i32
  }
  func.func @transform_2(%arg0: i32, %arg1: i32) -> (i32, i32, i32, i32) {
    %c1_i32 = arith.constant 1 : i32
    %0 = arith.muli %arg0, %c1_i32 : i32
    %1 = arith.addi %0, %arg1 : i32
    %c0_i32 = arith.constant 0 : i32
    %c0_i32_0 = arith.constant 0 : i32
    %c0_i32_1 = arith.constant 0 : i32
    %c0_i32_2 = arith.constant 0 : i32
    return %1, %c0_i32, %c0_i32_0, %c0_i32_1 : i32, i32, i32, i32
  }
  func.func @transform_3(%arg0: i32, %arg1: i32) -> (i32, i32, i32, i32) {
    %c1_i32 = arith.constant 1 : i32
    %0 = arith.muli %arg0, %c1_i32 : i32
    %1 = arith.addi %0, %arg1 : i32
    %c0_i32 = arith.constant 0 : i32
    %c0_i32_0 = arith.constant 0 : i32
    %c0_i32_1 = arith.constant 0 : i32
    %c0_i32_2 = arith.constant 0 : i32
    return %1, %c0_i32, %c0_i32_0, %c0_i32_1 : i32, i32, i32, i32
  }
  func.func @transform_4(%arg0: i32, %arg1: i32) -> (i32, i32, i32, i32) {
    %c1_i32 = arith.constant 1 : i32
    %0 = arith.muli %arg0, %c1_i32 : i32
    %1 = arith.addi %0, %arg1 : i32
    %c0_i32 = arith.constant 0 : i32
    %c0_i32_0 = arith.constant 0 : i32
    %c0_i32_1 = arith.constant 0 : i32
    %c0_i32_2 = arith.constant 0 : i32
    return %1, %c0_i32, %c0_i32_0, %c0_i32_1 : i32, i32, i32, i32
  }
  func.func @transform_5(%arg0: i32, %arg1: i32) -> (i32, i32) {
    %c0_i32 = arith.constant 0 : i32
    %c0_i32_0 = arith.constant 0 : i32
    %c0_i32_1 = arith.constant 0 : i32
    return %c0_i32, %c0_i32_0 : i32, i32
  }
  func.func @transform_6(%arg0: i32, %arg1: i32) -> (i32, i32) {
    %c0_i32 = arith.constant 0 : i32
    %c0_i32_0 = arith.constant 0 : i32
    %c0_i32_1 = arith.constant 0 : i32
    return %c0_i32, %c0_i32_0 : i32, i32
  }
  func.func @transform_7(%arg0: i32, %arg1: i32) -> (i32, i32, i32) {
    %c0_i32 = arith.constant 0 : i32
    %c0_i32_0 = arith.constant 0 : i32
    %c0_i32_1 = arith.constant 0 : i32
    return %arg0, %c0_i32, %c0_i32_0 : i32, i32, i32
  }
}

</mosaic_0001>

<bundles_post_ra>
// kernel: esc_loss.1
= control target key start
LH: loop header
LB: loop body
LE: loop exit
PB: predicated region body
PF: predicated region fallthrough
CT: control target
= control target key end

     0   :  { %s2883_s0 = inlined_call_operand.hbm [shape: f32[4,3,16,16], index: 0, kind: input, shape index: {}]   ;;  %s2884_s1 = inlined_call_operand.hbm [shape: f32[4,3,16,16], index: 1, kind: input, shape index: {}]   ;;  %s2885_s2 = inlined_call_operand.hbm [shape: f32[4,3,16,16], index: 2, kind: input, shape index: {}]   ;;  %s2886_s3 = inlined_call_operand.hbm [shape: f32[4,3,16,16], index: 3, kind: input, shape index: {}]   ;;  %s2887_s4 = inlined_call_operand.hbm [shape: f32[4,3,16,16], index: 4, kind: input, shape index: {}]   ;;  %s2888_s5 = inlined_call_operand.vmem [shape: f32[32,32], index: 5, kind: input, shape index: {}]   ;;  %s2889_s6 = inlined_call_operand.vmem [shape: f32[16,16], index: 6, kind: input, shape index: {}]   ;;  %s2890_s7 = inlined_call_operand.vmem [shape: f32[2,8,128], index: 7, kind: output, shape index: {}]  }
   0x1   :  { %2902 = sst [smem:[#allocation20_spill]] %s2883_s0 }
   0x2   :  { %2903 = sst [smem:[#allocation21_spill]] %s2884_s1 }
   0x3   :  { %2904 = sst [smem:[#allocation22_spill]] %s2886_s3 }
   0x4   :  { %2905 = sst [smem:[#allocation23_spill]] %s2890_s7 }
   0x5   :  { %12 = vsyncpa [#allocation6], 0 }
   0x6   :  { %14 = vsyncpa [#allocation6 + $0x1], 0 }
   0x7   :  { %15 = vsyncpa [#allocation8], 0 }
   0x8   :  { %17 = vsyncpa [#allocation8 + $0x1], 0 }
   0x9   :  { %18 = vsyncpa [#allocation11], 0 }
   0xa   :  { %20 = vsyncpa [#allocation11 + $0x1], 0  ;;  %s2120_s24 = smov 0   ;;  %s2122_s25 = smov 0  }
   0xb   :  { %s2124_s26 = smov 0   ;;  %s2126_s27 = smov 0  }
   0xc   :  { %s2128_s28 = smov 0   ;;  %s2130_s29 = smov 0  }
   0xd LB: > { %2906 = sst [smem:[#allocation16_spill]] %s2061_s27  ;;  %s2891_s30 = sadd.s32 4294967295, %s2069_s29   ;;  %s2069_s29 = sphi %s2130_s29, %s26_s29   ;;  %s2065_s28 = sphi %s2128_s28, %s2929_s28   ;;  %s2061_s27 = sphi %s2126_s27, %s2928_s27   ;;  %s2057_s26 = sphi %s2124_s26, %s2932_s26   ;;  %s2053_s25 = sphi %s2122_s25, %s2931_s25   ;;  %s2049_s24 = sphi %s2120_s24, %s2930_s24  }
   0xe   : > { %2907 = sst [smem:[#allocation17_spill]] %s2065_s28  ;;  %s38_s8 = sadd.s32 1, %s2065_s28 }
   0xf   : > { %p40_p0 = scmp.ge.s32.totalorder %s38_s8, 2  ;;  %s47_s9 = sadd.s32 1, %s2057_s26 }
  0x10   : > { %p54_p1 = scmp.ne.s32.totalorder %s2057_s26, %s2053_s25  ;;  %p55_p2 = scmp.eq.s32.totalorder %s2069_s29, 0 }
  0x11   : > { %s2934_s8 = smov (%p40_p0, %s38_s8), 0  ;;  %p60_p4 = scmp.ne.s32.totalorder %s2053_s25, %s2049_s24 }
  0x12   : > { %2908 = sst [smem:[#allocation18_spill]] %s2934_s8  ;;  %p56_p3 = por %p55_p2, %p54_p1 }
  0x13   : > { %s44_s10 = ssub.s32 %s2065_s28, %s2934_s8  ;;  %p61_p5 = scmp.eq.s32.totalorder %s2891_s30, 0 }
  0x14   : > { %p45_p6 = scmp.eq.s32.totalorder %s44_s10, 0  ;;  %p1808_p8 = scmp.lt.s32.totalorder %s2069_s29, 2 }
  0x15   : > { %p2161_p7 = por %p61_p5, %p60_p4  ;;  %s2892_s13 = sand.u32 1, %s2057_s26  }
  0x16   : > { %s2167_s12 = scalar_select %p45_p6, %s2057_s26, %s47_s9  }
  0x17   : > { %s2909_s11 = scalar_select %p2161_p7, 1, 0 }
  0x18   : > { %2910 = sst [smem:[#allocation19_spill]] %s2167_s12  ;;  %s2171_s14 = smul.u32 1536, %s2065_s28 }
  0x19   : > { %s2175_s15 = smul.u32 96, %s2892_s13  ;;  %p2177_p9 = pnand %p1808_p8, %p56_p3 }
  0x1a   : > { %s2894_s17 = sand.u32 1, %s2069_s29   ;;  %s2912_s1 = sld [smem:[#allocation21_spill]] }
  0x1b   : > { %s297_s21 = scalar_lea.vmem [#allocation7], %s2175_s15  ;;  %s2194_s23 = scalar_lea.sflag [#allocation8], %s2894_s17 }
  0x1c   : > { %s306_s22 = sshll.u32 %s297_s21, 4  ;;  %p2200_p12 = pneg %p2177_p9  ;;  %s2189_s22 = int_to_ptr.vmem [resolvable:$true] %s306_s22 }
  0x20   : > { %s2186_s20 = scalar_lea.hbm %s2912_s1, %s2171_s14  ;;  %s1866_s19 = scalar_lea.hbm %s2912_s1, 3072 }
  0x21   : > { %s1861_s24 = scalar_lea.hbm %s2186_s20, 1536  ;;  %p1867_p1 = scmp.lt.u32.totalorder %s2186_s20, %s2912_s1 }
  0x22   : > { %p1862_p11 = scmp.ne.s32.totalorder %s2186_s20, %s1861_s24  ;;  %p1868_p2 = scmp.lt.u32.totalorder %s1866_s19, %s1861_s24 }
  0x23   : > { %p1870_p4 = scmp.lt.u32.totalorder %s1861_s24, %s2186_s20 }
  0x24   : > { %p1864_p13 = pnand %p2200_p12, %p1862_p11  ;;  %p1869_p3 = por %p1868_p2, %p1867_p1 }
  0x26   : > { %p1865_p0 = pneg %p1864_p13  ;;  %p1871_p5 = por %p1870_p4, %p1869_p3 }
  0x28   : > { %p1872_p6 = pnand %p1871_p5, %p1865_p0 }
  0x2a   : > { %1875 = shalt.err (!%p1872_p6)
}
  0x2b   : > { %s1876_s13 = scalar_lea.vmem %s2189_s22, 1536  ;;  %s2071_s10 = smov [#allocation7]  }
  0x2c   : > { %p1877_p8 = scmp.ne.s32.totalorder %s2189_s22, %s1876_s13  ;;  %s1881_s18 = sshll.u32 %s2071_s10, 4  ;;  %s1882_s18 = int_to_ptr.vmem [resolvable:$false] %s1881_s18 }
  0x2d   : > { %s1883_s30 = scalar_lea.vmem %s1882_s18, 3072  ;;  %p1884_p10 = scmp.lt.s32.totalorder %s2189_s22, %s1882_s18 }
  0x2e   : > { %p1879_p11 = pnand %p1877_p8, %p2200_p12  ;;  %p1885_p7 = scmp.lt.s32.totalorder %s1883_s30, %s1876_s13 }
  0x30   : > { %p1880_p13 = pneg %p1879_p11  ;;  %p1886_p1 = por %p1885_p7, %p1884_p10 }
  0x32   : > { %p1887_p2 = pnand %p1886_p1, %p1880_p13 }
  0x34   : > { %1890 = shalt.err (!%p1887_p2)
}
  0x35   : > { %s2895_s24 = smov 128   ;;  %s2897_s19 = smov 8  }
  0x36   : > { %1798 = dma.hbm_to_vmem [thread:$0]  (!%p2177_p9), %s2186_s20, 1536, %s2189_s22, %s2194_s23, %s2895_s24, %s2895_s24, %s2897_s19  }
  0x37   : > { %p383_p7 = scmp.lt.s32.totalorder %s2069_s29, 3  ;;  %s2914_s3 = sld [smem:[#allocation22_spill]] }
  0x38   : > { %p2915_p10 = scmp.ge.s32.totalorder %s2069_s29, 1  ;;  %s343_s30 = scalar_lea.vmem [#allocation10], %s2175_s15 }
  0x39   : > { %s352_s17 = sshll.u32 %s343_s30, 4  ;;  %s2917_s20 = sand.u32 1, %s2069_s29   ;;  %s2241_s17 = int_to_ptr.vmem [resolvable:$true] %s352_s17 }
  0x3a   : > { %p2236_p0 = pnand %p2915_p10, %p383_p7  ;;  %s2245_s22 = scalar_lea.sflag [#allocation11], %s2917_s20 }
  0x3c   : > { %s2916_s18 = scalar_select %p2236_p0, 1, 0 }
  0x3d   : > { %s2232_s10 = scalar_lea.hbm %s2914_s3, %s2171_s14  ;;  %s1896_s19 = scalar_lea.hbm %s2914_s3, 3072 }
  0x3e   : > { %s1891_s24 = scalar_lea.hbm %s2232_s10, 1536  ;;  %p1897_p6 = scmp.lt.u32.totalorder %s2232_s10, %s2914_s3 }
  0x3f   : > { %p1892_p3 = scmp.ne.s32.totalorder %s2232_s10, %s1891_s24  ;;  %p1898_p8 = scmp.lt.u32.totalorder %s1896_s19, %s1891_s24 }
  0x40   : > { %p1900_p13 = scmp.lt.u32.totalorder %s1891_s24, %s2232_s10 }
  0x41   : > { %p1894_p4 = pnand %p1892_p3, %p2200_p12  ;;  %p1899_p11 = por %p1898_p8, %p1897_p6 }
  0x43   : > { %p1895_p5 = pneg %p1894_p4  ;;  %p1901_p1 = por %p1900_p13, %p1899_p11 }
  0x45   : > { %p1902_p2 = pnand %p1901_p1, %p1895_p5 }
  0x47   : > { %1905 = shalt.err (!%p1902_p2)
}
  0x48   : > { %s1906_s30 = scalar_lea.vmem %s2241_s17, 1536  ;;  %s2074_s20 = smov [#allocation10]  }
  0x49   : > { %p1907_p7 = scmp.ne.s32.totalorder %s2241_s17, %s1906_s30  ;;  %s1911_s13 = sshll.u32 %s2074_s20, 4  ;;  %s1912_s13 = int_to_ptr.vmem [resolvable:$false] %s1911_s13 }
  0x4a   : > { %s1913_s1 = scalar_lea.vmem %s1912_s13, 3072  ;;  %p1914_p4 = scmp.lt.s32.totalorder %s2241_s17, %s1912_s13 }
  0x4b   : > { %p1909_p10 = pnand %p1907_p7, %p2200_p12  ;;  %p1915_p0 = scmp.lt.s32.totalorder %s1913_s1, %s1906_s30 }
  0x4d   : > { %p1910_p3 = pneg %p1909_p10  ;;  %p1916_p6 = por %p1915_p0, %p1914_p4 }
  0x4f   : > { %p1917_p8 = pnand %p1916_p6, %p1910_p3 }
  0x51   : > { %1920 = shalt.err (!%p1917_p8)
}
  0x52   : > { %s2918_s8 = smov 8   ;;  %s2919_s24 = smov 128  }
  0x53   : > { %1804 = dma.hbm_to_vmem [thread:$0]  (!%p2177_p9), %s2232_s10, 1536, %s2241_s17, %s2245_s22, %s2919_s24, %s2919_s24, %s2918_s8  }
  0x54   : > { %s2920_s0 = sld [smem:[#allocation20_spill]]  ;;  %s274_s20 = scalar_lea.vmem [#allocation5], %s2175_s15 }
  0x55   : > { %s283_s13 = sshll.u32 %s274_s20, 4  ;;  %s2285_s28 = scalar_lea.hbm %s2885_s2, %s2171_s14  ;;  %s2279_s13 = int_to_ptr.vmem [resolvable:$true] %s283_s13 }
  0x56   : > { %s2921_s12 = sand.u32 1, %s2057_s26  }
  0x57   : > { %s2289_s17 = scalar_lea.sflag [#allocation6], %s2921_s12 }
  0x5a   : > { %s2276_s30 = scalar_lea.hbm %s2920_s0, %s2171_s14  ;;  %s1926_s7 = scalar_lea.hbm %s2920_s0, 3072 }
  0x5b   : > { %s1921_s10 = scalar_lea.hbm %s2276_s30, 1536  ;;  %p1927_p13 = scmp.lt.u32.totalorder %s2276_s30, %s2920_s0 }
  0x5c   : > { %p1922_p0 = scmp.ne.s32.totalorder %s2276_s30, %s1921_s10  ;;  %p1928_p1 = scmp.lt.u32.totalorder %s1926_s7, %s1921_s10 }
  0x5d   : > { %p1930_p7 = scmp.lt.u32.totalorder %s1921_s10, %s2276_s30 }
  0x5e   : > { %p1924_p5 = pnand %p1922_p0, %p2200_p12  ;;  %p1929_p2 = por %p1928_p1, %p1927_p13 }
  0x60   : > { %p1925_p11 = pneg %p1924_p5  ;;  %p1931_p10 = por %p1930_p7, %p1929_p2 }
  0x62   : > { %p1932_p3 = pnand %p1931_p10, %p1925_p11 }
  0x64   : > { %1935 = shalt.err (!%p1932_p3)
}
  0x65   : > { %s1936_s3 = scalar_lea.vmem %s2279_s13, 1536  ;;  %s2075_s12 = smov [#allocation5]  }
  0x66   : > { %p1937_p4 = scmp.ne.s32.totalorder %s2279_s13, %s1936_s3  ;;  %s1941_s1 = sshll.u32 %s2075_s12, 4  ;;  %s1942_s1 = int_to_ptr.vmem [resolvable:$false] %s1941_s1 }
  0x67   : > { %s1943_s27 = scalar_lea.vmem %s1942_s1, 3072  ;;  %p1944_p0 = scmp.lt.s32.totalorder %s2279_s13, %s1942_s1 }
  0x68   : > { %p1939_p6 = pnand %p1937_p4, %p2200_p12  ;;  %p1945_p5 = scmp.lt.s32.totalorder %s1943_s27, %s1936_s3 }
  0x6a   : > { %p1940_p8 = pneg %p1939_p6  ;;  %p1946_p13 = por %p1945_p5, %p1944_p0 }
  0x6c   : > { %p1947_p1 = pnand %p1946_p13, %p1940_p8 }
  0x6e   : > { %1950 = shalt.err (!%p1947_p1)
}
  0x6f   : > { %1795 = dma.hbm_to_vmem [thread:$0]  (!%p2177_p9), %s2276_s30, 1536, %s2279_s13, %s2289_s17, %s2919_s24, %s2919_s24, %s2918_s8  }
  0x70   : > { %s320_s7 = scalar_lea.vmem [#allocation9], %s2175_s15  ;;  %s2323_s20 = scalar_lea.hbm %s2887_s4, %s2171_s14 }
  0x71   : > { %s329_s10 = sshll.u32 %s320_s7, 4  ;;  %s1951_s3 = scalar_lea.hbm %s2285_s28, 1536  ;;  %s2317_s10 = int_to_ptr.vmem [resolvable:$true] %s329_s10 }
  0x72   : > { %p1952_p11 = scmp.ne.s32.totalorder %s2285_s28, %s1951_s3  ;;  %s1956_s27 = scalar_lea.hbm %s2885_s2, 3072 }
  0x73   : > { %p1957_p10 = scmp.lt.u32.totalorder %s2285_s28, %s2885_s2  ;;  %p1958_p3 = scmp.lt.u32.totalorder %s1956_s27, %s1951_s3 }
  0x74   : > { %p1954_p2 = pnand %p1952_p11, %p2200_p12  ;;  %p1960_p6 = scmp.lt.u32.totalorder %s1951_s3, %s2285_s28 }
  0x75   : > { %p1959_p4 = por %p1958_p3, %p1957_p10 }
  0x76   : > { %p1955_p7 = pneg %p1954_p2 }
  0x77   : > { %p1961_p8 = por %p1960_p6, %p1959_p4 }
  0x79   : > { %p1962_p0 = pnand %p1961_p8, %p1955_p7 }
  0x7b   : > { %1965 = shalt.err (!%p1962_p0)
}
  0x7c   : > { %s1966_s14 = scalar_lea.vmem %s2317_s10, 1536  ;;  %s2076_s13 = smov [#allocation9]  }
  0x7d   : > { %p1967_p5 = scmp.ne.s32.totalorder %s2317_s10, %s1966_s14  ;;  %s1971_s17 = sshll.u32 %s2076_s13, 4  ;;  %s1972_s17 = int_to_ptr.vmem [resolvable:$false] %s1971_s17 }
  0x7e   : > { %s1973_s0 = scalar_lea.vmem %s1972_s17, 3072  ;;  %p1974_p11 = scmp.lt.s32.totalorder %s2317_s10, %s1972_s17 }
  0x7f   : > { %p1969_p13 = pnand %p1967_p5, %p2200_p12  ;;  %p1975_p2 = scmp.lt.s32.totalorder %s1973_s0, %s1966_s14 }
  0x81   : > { %p1970_p1 = pneg %p1969_p13  ;;  %p1976_p10 = por %p1975_p2, %p1974_p11 }
  0x83   : > { %p1977_p3 = pnand %p1976_p10, %p1970_p1 }
  0x85   : > { %1980 = shalt.err (!%p1977_p3)
}
  0x86   : > { %1801 = dma.hbm_to_vmem [thread:$0]  (!%p2177_p9), %s2285_s28, 1536, %s2317_s10, %s2194_s23, %s2919_s24, %s2919_s24, %s2918_s8  }
  0x87   : > { %s366_s7 = scalar_lea.vmem [#allocation12], %s2175_s15  ;;  %s1981_s21 = scalar_lea.hbm %s2323_s20, 1536 }
  0x88   : > { %s375_s19 = sshll.u32 %s366_s7, 4  ;;  %p1982_p7 = scmp.ne.s32.totalorder %s2323_s20, %s1981_s21  ;;  %s2351_s19 = int_to_ptr.vmem [resolvable:$true] %s375_s19 }
  0x89   : > { %s1986_s1 = scalar_lea.hbm %s2887_s4, 3072  ;;  %p1987_p8 = scmp.lt.u32.totalorder %s2323_s20, %s2887_s4 }
  0x8a   : > { %p1984_p4 = pnand %p1982_p7, %p2200_p12  ;;  %p1988_p0 = scmp.lt.u32.totalorder %s1986_s1, %s1981_s21 }
  0x8b   : > { %p1990_p13 = scmp.lt.u32.totalorder %s1981_s21, %s2323_s20 }
  0x8c   : > { %p1985_p6 = pneg %p1984_p4  ;;  %p1989_p5 = por %p1988_p0, %p1987_p8 }
  0x8e   : > { %p1991_p1 = por %p1990_p13, %p1989_p5 }
  0x90   : > { %p1992_p11 = pnand %p1991_p1, %p1985_p6 }
  0x92   : > { %1995 = shalt.err (!%p1992_p11)
}
  0x93   : > { %s1996_s28 = scalar_lea.vmem %s2351_s19, 1536  ;;  %s2077_s15 = smov [#allocation12]  }
  0x94   : > { %p1997_p2 = scmp.ne.s32.totalorder %s2351_s19, %s1996_s28  ;;  %s2001_s23 = sshll.u32 %s2077_s15, 4  ;;  %s2002_s23 = int_to_ptr.vmem [resolvable:$false] %s2001_s23 }
  0x95   : > { %s2003_s10 = scalar_lea.vmem %s2002_s23, 3072  ;;  %p2004_p7 = scmp.lt.s32.totalorder %s2351_s19, %s2002_s23 }
  0x96   : > { %p1999_p10 = pnand %p1997_p2, %p2200_p12  ;;  %p2005_p4 = scmp.lt.s32.totalorder %s2003_s10, %s1996_s28 }
  0x98   : > { %p2000_p3 = pneg %p1999_p10  ;;  %p2006_p8 = por %p2005_p4, %p2004_p7 }
  0x9a   : > { %p2007_p0 = pnand %p2006_p8, %p2000_p3 }
  0x9c   : > { %2010 = shalt.err (!%p2007_p0)
}
  0x9d   : > { %1807 = dma.hbm_to_vmem [thread:$0]  (!%p2177_p9), %s2323_s20, 1536, %s2351_s19, %s2245_s22, %s2919_s24, %s2919_s24, %s2918_s8  }
  0x9e   : > { %p2922_p12 = scmp.ne.s32.totalorder %s2916_s18, 0 }
  0x9f   : > { %s389_s9 = sand.u32 (!%p2922_p12), 1, %s2053_s25   ;;  %p2923_p6 = scmp.ne.s32.totalorder (!%p2922_p12), %s2909_s11, 0 }
  0xa0   : > { %387 = sbr.rel (%p2922_p12) target bundleno = 1056 (0x420), region = 48  ;;  %s390_s13 = scalar_lea.sflag (!%p2922_p12), [#allocation6], %s389_s9 }
  0xa1   : > { %s2381_s14 = smul.u32 (!%p2922_p12), 96, %s389_s9 }
  0xa3   : > { %s2384_s17 = scalar_lea.vmem (!%p2922_p12), [#allocation5], %s2381_s14 }
  0xa7   : > { %2036 = dma.done.wait (%p2923_p6), %s390_s13, 1536  }
  0xa8   : > { %2038 = vsyncadd (%p2923_p6), %s390_s13, 4294965760  ;;  %s2924_s16 = sadd.s32 4294967295, %s2069_s29   ;;  %s2393_s8 = scalar_lea.vmem [#allocation7], %s2381_s14 }
  0xa9   : > { %s398_s18 = sand.u32 1, %s2924_s16  }
  0xaa   : > { %s399_s22 = scalar_lea.sflag [#allocation8], %s398_s18 }
  0xab   : > { %2040 = dma.done.wait (%p2923_p6), %s399_s22, 3072  }
  0xac   : > { %2042 = vsyncadd (%p2923_p6), %s399_s22, 4294964224  ;;  %s2400_s24 = scalar_lea.vmem [#allocation9], %s2381_s14  ;;  %s417_s20 = scalar_lea.sflag [#allocation11], %s398_s18 }
  0xad   : > { %s2403_s0 = scalar_lea.vmem [#allocation10], %s2381_s14 }
  0xae   : > { %2044 = dma.done.wait (%p2923_p6), %s417_s20, 3072  }
  0xaf   : > { %2046 = vsyncadd (%p2923_p6), %s417_s20, 4294964224  ;;  %vm497_vm0 = vcmask 130048   ;;  %v2078_v0 = vmov 0.0   ;;  %v2416_v1 = vld [vmem:[%s2384_s17] sm:$0xff]  ;;  %v2419_v2 = vld [vmem:[%s2384_s17 + $0x8] sm:$0xff]  ;;  %vm809_vm1 = vcmask 261120  }
  0xb0   : > { %498 = vst.msk [vmem:[#allocation2] sm:$0xff] %vm497_vm0, %v2078_v0  ;;  %499 = vst.msk [vmem:[#allocation2 + $0x8] sm:$0xff] %vm497_vm0, %v2078_v0  ;;  %v2422_v3 = vld [vmem:[%s2384_s17 + $0x10] sm:$0xff]  ;;  %v2425_v4 = vld [vmem:[%s2384_s17 + $0x18] sm:$0xff]  ;;  %s2606_s10 = scalar_lea.vmem [#allocation12], %s2381_s14  ;;  %s2079_s9 = smov 127  }
  0xb1   : > { %503 = vst.msk [vmem:[#allocation4] sm:$0xff] %vm497_vm0, %v2078_v0  ;;  %v2428_v5 = vld [vmem:[%s2384_s17 + $0x20] sm:$0xff]  ;;  %v519_v7 = vld [vmem:[%s2393_s8 + $0x8] sm:$0xff]  ;;  %v520_v8 = vld [vmem:[%s2393_s8 + $0x10] sm:$0xff]  ;;  %vm500_vm14 = vcmask 121856   ;;  %vm504_vm15 = vcmask 129024  }
  0xb2   : > { %v518_v6 = vld [vmem:[%s2393_s8] sm:$0xff]  ;;  %v2434_v9 = vld [vmem:[%s2384_s17 + $0x28] sm:$0xff]  ;;  %v521_v10 = vld [vmem:[%s2393_s8 + $0x18] sm:$0xff]  ;;  %v567_v14 = vsub.f32 1.0, %v519_v7  ;;  %v568_v15 = vsub.f32 1.0, %v520_v8  ;;  %v732_v23 = vadd.f32 %v519_v7, %v2419_v2  ;;  %v733_v30 = vadd.f32 %v520_v8, %v2422_v3  ;;  %501 = vst.msk [vmem:[#allocation3] sm:$0xff] %vm500_vm14, %v2078_v0 }
  0xb3   : > { %v522_v11 = vld [vmem:[%s2393_s8 + $0x20] sm:$0xff]  ;;  %v523_v12 = vld [vmem:[%s2393_s8 + $0x28] sm:$0xff]  ;;  %v566_v13 = vsub.f32 1.0, %v518_v6  ;;  %v731_v16 = vadd.f32 %v518_v6, %v2416_v1  ;;  %v532_v19 = vld [vmem:[%s2400_s24 + $0x10] sm:$0xff]  ;;  %v569_v20 = vsub.f32 1.0, %v521_v10  ;;  %v734_v34 = vadd.f32 %v521_v10, %v2425_v4  ;;  %502 = vst.msk [vmem:[#allocation3 + $0x8] sm:$0xff] %vm500_vm14, %v2078_v0 }
  0xb4   : > { %v530_v17 = vld [vmem:[%s2400_s24] sm:$0xff]  ;;  %v531_v18 = vld [vmem:[%s2400_s24 + $0x8] sm:$0xff]  ;;  %v570_v21 = vsub.f32 1.0, %v522_v11  ;;  %v571_v22 = vsub.f32 1.0, %v523_v12  ;;  %v533_v24 = vld [vmem:[%s2400_s24 + $0x18] sm:$0xff]  ;;  %v2451_v29 = vmul.f32 %v568_v15, %v532_v19  ;;  %v735_v35 = vadd.f32 %v522_v11, %v2428_v5  ;;  %s2925_s14 = sld [smem:[#allocation16_spill]] }
  0xb5   : > { %v534_v25 = vld [vmem:[%s2400_s24 + $0x20] sm:$0xff]  ;;  %v535_v26 = vld [vmem:[%s2400_s24 + $0x28] sm:$0xff]  ;;  %v2447_v27 = vmul.f32 %v566_v13, %v530_v17  ;;  %v2449_v28 = vmul.f32 %v567_v14, %v531_v18  ;;  %v2454_v31 = vmul.f32 %v569_v20, %v533_v24  ;;  %v2463_v36 = vld [vmem:[%s2384_s17 + $0x30] sm:$0xff]  ;;  %v736_v38 = vadd.f32 %v523_v12, %v2434_v9  ;;  %505 = vst.msk [vmem:[#allocation4 + $0x8] sm:$0x7f] %vm504_vm15, %v2078_v0  ;;  %s2926_s18 = sld [smem:[#allocation23_spill]] }
  0xb6   : > { %v2456_v32 = vmul.f32 %v570_v21, %v534_v25  ;;  %v2458_v33 = vmul.f32 %v571_v22, %v535_v26  ;;  %v2466_v37 = vld [vmem:[%s2384_s17 + $0x38] sm:$0xff]  ;;  %v2470_v39 = vld [vmem:[%s2393_s8 + $0x30] sm:$0xff]  ;;  %v743_v41 = vmul.f32 %v731_v16, %v530_v17  ;;  %v744_v42 = vmul.f32 %v732_v23, %v531_v18  ;;  %v2476_v47 = vld [vmem:[%s2384_s17 + $0x40] sm:$0xff] }
  0xb7   : > { %v2473_v40 = vld [vmem:[%s2393_s8 + $0x38] sm:$0xff]  ;;  %v745_v43 = vmul.f32 %v733_v30, %v532_v19  ;;  %v746_v44 = vmul.f32 %v734_v34, %v533_v24  ;;  %v747_v45 = vmul.f32 %v735_v35, %v534_v25  ;;  %v748_v46 = vmul.f32 %v736_v38, %v535_v26  ;;  %v2483_v50 = vld [vmem:[%s2384_s17 + $0x48] sm:$0xff]  ;;  %v2486_v51 = vld [vmem:[%s2384_s17 + $0x50] sm:$0xff] }
  0xb8   : > { %v737_v48 = vadd.f32 %v2470_v39, %v2463_v36  ;;  %v738_v49 = vadd.f32 %v2473_v40, %v2466_v37  ;;  %vm755_vm2 = vcmp.ne.f32.partialorder %v743_v41, 0.0  ;;  %vm756_vm3 = vcmp.ne.f32.partialorder %v744_v42, 0.0  ;;  %v2489_v52 = vld [vmem:[%s2384_s17 + $0x58] sm:$0xff]  ;;  %v2492_v53 = vld [vmem:[%s2393_s8 + $0x40] sm:$0xff]  ;;  %v2495_v54 = vld [vmem:[%s2393_s8 + $0x48] sm:$0xff] }
  0xb9   : > { %vm757_vm4 = vcmp.ne.f32.partialorder %v745_v43, 0.0  ;;  %vm758_vm5 = vcmp.ne.f32.partialorder %v746_v44, 0.0  ;;  %vm759_vm6 = vcmp.ne.f32.partialorder %v747_v45, 0.0  ;;  %vm760_vm7 = vcmp.ne.f32.partialorder %v748_v46, 0.0  ;;  %v2500_v57 = vld [vmem:[%s2393_s8 + $0x50] sm:$0xff]  ;;  %v2512_v63 = vld [vmem:[%s2393_s8 + $0x58] sm:$0xff] }
  0xba   : > { %v767_v55 = vsel %vm755_vm2, 1.0, %v2078_v0  ;;  %v768_v56 = vsel %vm756_vm3, 1.0, %v2078_v0  ;;  %v2505_v58 = vld [vmem:[%s2888_s5] sm:$0xff]  ;;  %v769_v59 = vsel %vm757_vm4, 1.0, %v2078_v0  ;;  %v770_v60 = vsel %vm758_vm5, 1.0, %v2078_v0  ;;  %v2524_v12 = vld [vmem:[%s2400_s24 + $0x38] sm:$0xff] }
  0xbb   : > { %v771_v61 = vsel %vm759_vm6, 1.0, %v2078_v0  ;;  %v772_v62 = vsel %vm760_vm7, 1.0, %v2078_v0  ;;  %v2515_v6 = vld [vmem:[%s2400_s24 + $0x30] sm:$0xff]  ;;  %1707 = vmatprep.mubr.msk.f32.mxu0 %vm809_vm1, %v2505_v58  ;;  %v779_v7 = vsel %vm497_vm0, %v767_v55, 0.0  ;;  %v780_v8 = vsel %vm497_vm0, %v769_v59, 0.0  ;;  %v2527_v13 = vld [vmem:[%s2400_s24 + $0x40] sm:$0xff] }
  0xbc   : > { %v782_v10 = vsel %vm497_vm0, %v771_v61, 0.0  ;;  %v784_v11 = vsel %vm497_vm0, %v768_v56, 0.0  ;;  %v781_v14 = vadd.f32 %v780_v8, %v779_v7  ;;  %v785_v15 = vsel %vm497_vm0, %v770_v60, 0.0  ;;  %v2532_v17 = vld [vmem:[%s2400_s24 + $0x48] sm:$0xff]  ;;  %v2535_v18 = vld [vmem:[%s2400_s24 + $0x50] sm:$0xff]  ;;  %v2538_v19 = vld [vmem:[%s2400_s24 + $0x58] sm:$0xff] }
  0xbd   : > { %v787_v16 = vsel %vm497_vm0, %v772_v62, 0.0  ;;  %v739_v20 = vadd.f32 %v2492_v53, %v2476_v47  ;;  %v786_v21 = vadd.f32 %v785_v15, %v784_v11  ;;  %v740_v22 = vadd.f32 %v2495_v54, %v2483_v50  ;;  %v807_v55 = vld [vmem:[%s2889_s6] sm:$0xff]  ;;  %v808_v56 = vld [vmem:[%s2889_s6 + $0x8] sm:$0xff]  ;;  %p489_p9 = scmp.lt.s32.totalorder %s2925_s14, 1 }
  0xbe   : > { %v741_v23 = vadd.f32 %v2500_v57, %v2486_v51  ;;  %v742_v24 = vadd.f32 %v2512_v63, %v2489_v52  ;;  %v783_v25 = vadd.f32 %v782_v10, %v781_v14  ;;  %v749_v26 = vmul.f32 %v737_v48, %v2515_v6 }
  0xbf   : > { %v750_v30 = vmul.f32 %v738_v49, %v2524_v12  ;;  %v751_v34 = vmul.f32 %v739_v20, %v2527_v13  ;;  %v788_v35 = vadd.f32 %v787_v16, %v786_v21  ;;  %v752_v38 = vmul.f32 %v740_v22, %v2532_v17  ;;  %s2936_s14 = smov (!%p489_p9, %s2925_s14), 1 }
  0xc0   : > { %v753_v41 = vmul.f32 %v741_v23, %v2535_v18  ;;  %v754_v42 = vmul.f32 %v742_v24, %v2538_v19  ;;  %v799_v43 = vsub.f32 3.0, %v783_v25  ;;  %vm761_vm8 = vcmp.ne.f32.partialorder %v749_v26, 0.0  ;;  %s1652_s13 = sshll.u32 %s2936_s14, 3 }
  0xc1   : > { %vm762_vm9 = vcmp.ne.f32.partialorder %v750_v30, 0.0  ;;  %vm763_vm10 = vcmp.ne.f32.partialorder %v751_v34, 0.0  ;;  %v800_v44 = vsub.f32 3.0, %v788_v35  ;;  %vm764_vm11 = vcmp.ne.f32.partialorder %v752_v38, 0.0  ;;  %v804_v30 = vld [vmem:[%s2888_s5 + $0x8] sm:$0xff]  ;;  %v805_v34 = vld [vmem:[%s2888_s5 + $0x10] sm:$0xff]  ;;  %s492_s22 = scalar_lea.vmem %s2926_s18, %s1652_s13 }
  0xc2   : > { %vm765_vm12 = vcmp.ne.f32.partialorder %v753_v41, 0.0  ;;  %vm766_vm13 = vcmp.ne.f32.partialorder %v754_v42, 0.0  ;;  %v773_v45 = vsel %vm761_vm8, 1.0, %v2078_v0  ;;  %v774_v46 = vsel %vm762_vm9, 1.0, %v2078_v0  ;;  %v806_v38 = vld [vmem:[%s2888_s5 + $0x18] sm:$0xff] }
  0xc3   : > { %v775_v48 = vsel %vm763_vm10, 1.0, %v2078_v0  ;;  %v776_v49 = vsel %vm764_vm11, 1.0, %v2078_v0  ;;  %v1747_v59 = vpack.c.bf16 %v800_v44, %v799_v43  ;;  %v777_v60 = vsel %vm765_vm12, 1.0, %v2078_v0 }
  0xc4   : > { %v778_v61 = vsel %vm766_vm13, 1.0, %v2078_v0  ;;  %v789_v62 = vsel %vm497_vm0, %v773_v45, 0.0  ;;  %v790_v7 = vsel %vm497_vm0, %v775_v48, 0.0  ;;  %v792_v8 = vsel %vm497_vm0, %v777_v60, 0.0  ;;  %v554_v60 = vld [vmem:[%s2606_s10] sm:$0xff] }
  0xc5   : > { %v794_v10 = vsel %vm497_vm0, %v774_v46, 0.0  ;;  %v795_v11 = vsel %vm497_vm0, %v776_v49, 0.0  ;;  %1748 = vmatprep.subr.bf16.mxu0 %v1747_v59  ;;  %v791_v14 = vadd.f32 %v790_v7, %v789_v62  ;;  %v797_v16 = vsel %vm497_vm0, %v778_v61, 0.0  ;;  %v542_v49 = vld [vmem:[%s2403_s0] sm:$0xff]  ;;  %v556_v61 = vld [vmem:[%s2606_s10 + $0x10] sm:$0xff]  ;;  %v543_v62 = vld [vmem:[%s2403_s0 + $0x8] sm:$0xff] }
  0xc6   : > { %v796_v15 = vadd.f32 %v795_v11, %v794_v10  ;;  %v1755_v20 = vpack.c.bf16 %v808_v56, %v807_v55  ;;  %1750 = vmatpush3.bf16.msra.mxu0 %v1747_v59  ;;  %v1759_v41 = vpack.c.bf16 %v788_v35, %v783_v25  ;;  %v602_v25 = vmul.f32 %v2447_v27, %v2416_v1  ;;  %v544_v56 = vld [vmem:[%s2403_s0 + $0x10] sm:$0xff] }
  0xc7   : > { %v793_v21 = vadd.f32 %v792_v8, %v791_v14  ;;  %v603_v35 = vmul.f32 %v2449_v28, %v2419_v2  ;;  %v604_v48 = vmul.f32 %v2451_v29, %v2422_v3  ;;  %v671_v55 = vsub.f32 1.0, %v2416_v1 }
  0xc8   : > { %v798_v22 = vadd.f32 %v797_v16, %v796_v15  ;;  %1756 = vmatprep.subr.bf16.mxu1 %v1755_v20  ;;  %v605_v59 = vmul.f32 %v2454_v31, %v2425_v4  ;;  %v672_v7 = vsub.f32 1.0, %v2419_v2  ;;  %v674_v8 = vsub.f32 1.0, %v2425_v4  ;;  %v555_v15 = vld [vmem:[%s2606_s10 + $0x8] sm:$0xff]  ;;  %v545_v4 = vld [vmem:[%s2403_s0 + $0x18] sm:$0xff] }
  0xc9   : > { %1758 = vmatpush3.bf16.msra.mxu1 %v1755_v20  ;;  %v801_v23 = vsub.f32 3.0, %v793_v21  ;;  %v572_v1 = vsub.f32 1.0, %v2470_v39  ;;  %v683_v10 = vmul.f32 %v671_v55, %v2447_v27  ;;  %v695_v11 = vsub.f32 %v554_v60, %v542_v49 }
  0xca   : > { %v802_v24 = vsub.f32 3.0, %v798_v22  ;;  %1760 = vmatprep.subr.bf16.mxu1 %v1759_v41  ;;  %v1763_v44 = vpack.c.bf16 %v798_v22, %v793_v21  ;;  %v592_v14 = vsub.f32 %v544_v56, %v556_v61  ;;  %v591_v21 = vsub.f32 %v543_v62, %v555_v15 }
  0xcb   : > { %v684_v22 = vmul.f32 %v672_v7, %v2449_v28  ;;  %v686_v27 = vmul.f32 %v674_v8, %v2454_v31  ;;  %v677_v7 = vsub.f32 1.0, %v2463_v36  ;;  %v561_v8 = vld [vmem:[%s2606_s10 + $0x38] sm:$0xff]  ;;  %vm1319_vm5 = vcmask 1046528  }
  0xcc   : > { %v1751_v26 = vpack.c.bf16 %v802_v24, %v801_v23  ;;  %v707_v23 = vmul.f32 %v695_v11, %v683_v10  ;;  %v616_v24 = vmul.f32 %v604_v48, %v592_v14  ;;  %v615_v39 = vmul.f32 %v603_v35, %v591_v21  ;;  %v548_v48 = vld [vmem:[%s2403_s0 + $0x30] sm:$0xff]  ;;  %v562_v21 = vld [vmem:[%s2606_s10 + $0x40] sm:$0xff] }
  0xcd   : > { %v573_v11 = vsub.f32 1.0, %v2473_v40  ;;  %v574_v40 = vsub.f32 1.0, %v2492_v53  ;;  %v575_v53 = vsub.f32 1.0, %v2495_v54  ;;  %v680_v54 = vsub.f32 1.0, %v2483_v50 }
  0xce   : > { %1752 = vmatprep.subr.bf16.mxu0 %v1751_v26  ;;  %v627_v28 = vmul.f32 %v615_v39, %v615_v39 }
  0xcf   : > { %1754 = vmatpush3.bf16.msra.mxu0 %v1751_v26  ;;  %v696_v26 = vsub.f32 %v555_v15, %v543_v62 }
  0xd0   : > { %1768 = vmatprep.subr.bf16.mxu0 %v1755_v20 }
  0xd2   : > { %1708 = vmatmul.mubr.msk.f32.vlgmr.msra.gmra.mrb[0].mxu0 %vm809_vm1, %v804_v30 }
  0xd3   : > { %1710 = vmatprep.mubr.msk.f32.mxu0 %vm809_vm1, %v805_v34  ;;  %1770 = vmatpush3.bf16.msra.mxu0 %v1755_v20  ;;  %v697_v20 = vsub.f32 %v556_v61, %v544_v56 }
  0xd6   : > { %1711 = vmatmul.mubr.msk.f32.gmra.mrb[2].mxu0 %vm809_vm1, %v806_v38 }
 0x1a5   : > { %v1709_v42 = vpop.f32.mrb[0].mxu0 }
 0x1a6   : > { %v888_v43 = vpop.f32.mrb[1].mxu0 }
 0x1a7   : > { %1717 = vmatprep.mubr.msk.f32.mxu1 %vm497_vm0, %v888_v43  ;;  %v708_v43 = vmul.f32 %v696_v26, %v684_v22  ;;  %v585_v22 = vmul.f32 %v573_v11, %v2524_v12  ;;  %v586_v12 = vmul.f32 %v574_v40, %v2527_v13  ;;  %v587_v13 = vmul.f32 %v575_v53, %v2532_v17 }
 0x1a8   : > { %1718 = vmatmul.mubr.msk.f32.vlgmr.msra.gmra.mrb[0].mxu1 %vm497_vm0, %v1709_v42  ;;  %v628_v42 = vmul.f32 %v616_v24, %v616_v24  ;;  %v607_v17 = vmul.f32 %v2458_v33, %v2434_v9 }
 0x1a9   : > { %1762 = vmatpush3.bf16.msra.mxu1 %v1759_v41  ;;  %v1712_v45 = vpop.f32.mrb[2].mxu0  ;;  %v2621_v41 = vadd.f32 %v707_v23, %v542_v49  ;;  %v2629_v35 = vadd.f32 %v708_v43, %v543_v62  ;;  %v549_v62 = vld [vmem:[%s2403_s0 + $0x38] sm:$0xff]  ;;  %v678_v23 = vsub.f32 1.0, %v2466_v37 }
 0x1aa   : > { %v898_v46 = vpop.f32.mrb[3].mxu0  ;;  %1764 = vmatprep.subr.bf16.mxu1 %v1763_v44  ;;  %v640_v31 = vsel %vm497_vm0, %v628_v42, 0.0  ;;  %v597_v14 = vsub.f32 %v549_v62, %v561_v8  ;;  %v610_v42 = vmul.f32 %v586_v12, %v2476_v47 }
 0x1ab   : > { %1720 = vmatprep.mubr.msk.f32.mxu1 %vm497_vm0, %v898_v46  ;;  %1222 = vrot.lane.b32.xlu0 %v2621_v41, %s2079_s9 }
 0x1ac   : > { %1721 = vmatmul.mubr.msk.f32.gmra.mrb[2].mxu1 %vm497_vm0, %v1712_v45 }
 0x1ad   : > { %1766 = vmatpush3.bf16.msra.mxu1 %v1763_v44  ;;  %1731 = vmatprep.mubr.msk.f32.mxu1 %vm809_vm1, %v2505_v58  ;;  %v673_v58 = vsub.f32 1.0, %v2422_v3  ;;  %v590_v3 = vsub.f32 %v542_v49, %v554_v60  ;;  %v560_v49 = vld [vmem:[%s2606_s10 + $0x30] sm:$0xff]  ;;  %v584_v60 = vmul.f32 %v572_v1, %v2515_v6 }
 0x1ae   : > { %v596_v61 = vsub.f32 %v548_v48, %v560_v49  ;;  %v701_v10 = vsub.f32 %v560_v49, %v548_v48 }
 0x1af   : > { %v685_v16 = vmul.f32 %v673_v58, %v2451_v29  ;;  %v614_v2 = vmul.f32 %v602_v25, %v590_v3  ;;  %1224 = vrot.lane.b32.xlu0 %v2629_v35, %s2079_s9  ;;  %v608_v6 = vmul.f32 %v584_v60, %v2463_v36  ;;  %v689_v1 = vmul.f32 %v677_v7, %v584_v60 }
 0x1b0   : > { %1732 = vmatmul.mubr.msk.f32.vlgmr.msra.gmra.mrb[4].mxu1 %vm809_vm1, %v804_v30  ;;  %v557_v30 = vld [vmem:[%s2606_s10 + $0x18] sm:$0xff]  ;;  %v679_v36 = vsub.f32 1.0, %v2476_v47  ;;  %v546_v47 = vld [vmem:[%s2403_s0 + $0x20] sm:$0xff] }
 0x1b1   : > { %1734 = vmatprep.mubr.msk.f32.mxu1 %vm809_vm1, %v805_v34  ;;  %v709_v34 = vmul.f32 %v697_v20, %v685_v16  ;;  %v626_v29 = vmul.f32 %v614_v2, %v614_v2  ;;  %v698_v46 = vsub.f32 %v557_v30, %v545_v4  ;;  %v550_v20 = vld [vmem:[%s2403_s0 + $0x40] sm:$0xff]  ;;  %v702_v2 = vsub.f32 %v561_v8, %v549_v62 }
 0x1b2   : > { %v620_v24 = vmul.f32 %v608_v6, %v596_v61  ;;  %v713_v26 = vmul.f32 %v701_v10, %v689_v1  ;;  %v703_v39 = vsub.f32 %v562_v21, %v550_v20  ;;  %v691_v43 = vmul.f32 %v679_v36, %v586_v12  ;;  %v559_v6 = vld [vmem:[%s2606_s10 + $0x28] sm:$0xff]  ;;  %v565_v36 = vld [vmem:[%s2606_s10 + $0x58] sm:$0xff] }
 0x1b3   : > { %v2623_v44 = vadd.f32 %v709_v34, %v544_v56  ;;  %v639_v25 = vsel %vm497_vm0, %v626_v29, 0.0  ;;  %v644_v56 = vsel %vm497_vm0, %v627_v28, 0.0  ;;  %v690_v34 = vmul.f32 %v678_v23, %v585_v22  ;;  %v551_v28 = vld [vmem:[%s2403_s0 + $0x48] sm:$0xff] }
 0x1b4   : > { %1735 = vmatmul.mubr.msk.f32.gmra.mrb[6].mxu1 %vm809_vm1, %v806_v38  ;;  %v593_v38 = vsub.f32 %v545_v4, %v557_v30  ;;  %v2635_v55 = vadd.f32 %v640_v31, %v639_v25  ;;  %v609_v30 = vmul.f32 %v585_v22, %v2466_v37  ;;  %v606_v37 = vmul.f32 %v2456_v32, %v2428_v5 }
 0x1b5   : > { %1226 = vrot.lane.b32.xlu1 %v2623_v44, %s2079_s9  ;;  %v714_v29 = vmul.f32 %v702_v2, %v690_v34  ;;  %v632_v25 = vmul.f32 %v620_v24, %v620_v24  ;;  %v715_v49 = vmul.f32 %v703_v39, %v691_v43  ;;  %v675_v8 = vsub.f32 1.0, %v2428_v5 }
 0x1b6   : > { %v617_v45 = vmul.f32 %v605_v59, %v593_v38  ;;  %v710_v59 = vmul.f32 %v698_v46, %v686_v27  ;;  %v2661_v38 = vadd.f32 %v713_v26, %v548_v48  ;;  %v621_v27 = vmul.f32 %v609_v30, %v597_v14  ;;  %v547_v14 = vld [vmem:[%s2403_s0 + $0x28] sm:$0xff] }
 0x1b7   : > { %v2673_v31 = vadd.f32 %v714_v29, %v549_v62  ;;  %v2682_v62 = vadd.f32 %v715_v49, %v550_v20  ;;  %v687_v1 = vmul.f32 %v675_v8, %v2456_v32  ;;  %v649_v22 = vsel %vm497_vm0, %v632_v25, 0.0 }
 0x1b8   : > { %v629_v58 = vmul.f32 %v617_v45, %v617_v45  ;;  %v2646_v15 = vadd.f32 %v710_v59, %v545_v4  ;;  %v598_v4 = vsub.f32 %v550_v20, %v562_v21  ;;  %v563_v45 = vld [vmem:[%s2606_s10 + $0x48] sm:$0xff]  ;;  %1234 = vrot.lane.b32.xlu0 %v2661_v38, %s2079_s9  ;;  %v692_v59 = vmul.f32 %v680_v54, %v587_v13 }
 0x1b9   : > { %v599_v46 = vsub.f32 %v551_v28, %v563_v45  ;;  %v704_v60 = vsub.f32 %v563_v45, %v551_v28  ;;  %v633_v7 = vmul.f32 %v621_v27, %v621_v27  ;;  %v595_v21 = vsub.f32 %v547_v14, %v559_v6  ;;  %v552_v45 = vld [vmem:[%s2403_s0 + $0x50] sm:$0xff] }
 0x1ba   : > { %v645_v3 = vsel %vm497_vm0, %v629_v58, 0.0  ;;  %1228 = vrot.lane.b32.xlu1 %v2646_v15, %s2079_s9  ;;  %v622_v48 = vmul.f32 %v610_v42, %v598_v4  ;;  %v611_v58 = vmul.f32 %v587_v13, %v2483_v50  ;;  %v676_v26 = vsub.f32 1.0, %v2434_v9  ;;  %v553_v4 = vld [vmem:[%s2403_s0 + $0x58] sm:$0xff] }
 0x1bb   : > { %v2648_v16 = vadd.f32 %v645_v3, %v644_v56  ;;  %v558_v56 = vld [vmem:[%s2606_s10 + $0x20] sm:$0xff]  ;;  %v716_v10 = vmul.f32 %v704_v60, %v692_v59  ;;  %v619_v24 = vmul.f32 %v607_v17, %v595_v21  ;;  %v654_v30 = vsel %vm497_vm0, %v633_v7, 0.0 }
 0x1bc   : > { %v594_v61 = vsub.f32 %v546_v47, %v558_v56  ;;  %v623_v3 = vmul.f32 %v611_v58, %v599_v46  ;;  %v699_v50 = vsub.f32 %v558_v56, %v546_v47  ;;  %1238 = vrot.lane.b32.xlu0 %v2682_v62, %s2079_s9  ;;  %v634_v20 = vmul.f32 %v622_v48, %v622_v48 }
 0x1bd   : > { %v2691_v23 = vadd.f32 %v716_v10, %v551_v28  ;;  %v700_v34 = vsub.f32 %v559_v6, %v547_v14  ;;  %v577_v12 = vsub.f32 1.0, %v2512_v63  ;;  %v631_v27 = vmul.f32 %v619_v24, %v619_v24  ;;  %v666_v6 = vld [vmem:[#allocation2 + $0x8] sm:$0xff] }
 0x1be   : > { %1236 = vrot.lane.b32.xlu1 %v2673_v31, %s2079_s9  ;;  %v618_v11 = vmul.f32 %v606_v37, %v594_v61  ;;  %v635_v2 = vmul.f32 %v623_v3, %v623_v3  ;;  %v711_v40 = vmul.f32 %v699_v50, %v687_v1  ;;  %v601_v9 = vsub.f32 %v553_v4, %v565_v36  ;;  %v564_v37 = vld [vmem:[%s2606_s10 + $0x50] sm:$0xff] }
 0x1bf   : > { %v688_v29 = vmul.f32 %v676_v26, %v2458_v33  ;;  %v589_v42 = vmul.f32 %v577_v12, %v2538_v19  ;;  %v682_v43 = vsub.f32 1.0, %v2489_v52  ;;  %v706_v28 = vsub.f32 %v565_v36, %v553_v4 }
 0x1c0   : > { %v630_v5 = vmul.f32 %v618_v11, %v618_v11  ;;  %v2701_v39 = vadd.f32 %v711_v40, %v546_v47  ;;  %v650_v13 = vsel %vm497_vm0, %v634_v20, 0.0  ;;  %v655_v46 = vsel %vm497_vm0, %v635_v2, 0.0  ;;  %v665_v40 = vld [vmem:[#allocation2] sm:$0xff] }
 0x1c1   : > { %v647_v63 = vsel %vm497_vm0, %v631_v27, 0.0  ;;  %v712_v54 = vmul.f32 %v700_v34, %v688_v29  ;;  %v613_v19 = vmul.f32 %v589_v42, %v2489_v52  ;;  %v694_v25 = vmul.f32 %v682_v43, %v589_v42 }
 0x1c2   : > { %1240 = vrot.lane.b32.xlu1 %v2691_v23, %s2079_s9  ;;  %v642_v32 = vsel %vm497_vm0, %v630_v5, 0.0  ;;  %1230 = vrot.lane.b32.xlu0 %v2701_v39, %s2079_s9  ;;  %v648_v33 = vadd.f32 %v647_v63, %v2648_v16  ;;  %v600_v49 = vsub.f32 %v552_v45, %v564_v37  ;;  %v681_v47 = vsub.f32 1.0, %v2486_v51 }
 0x1c3   : > { %v643_v53 = vadd.f32 %v642_v32, %v2635_v55  ;;  %v576_v55 = vsub.f32 1.0, %v2500_v57  ;;  %v705_v56 = vsub.f32 %v564_v37, %v552_v45  ;;  %v656_v58 = vadd.f32 %v655_v46, %v654_v30 }
 0x1c4   : > { %v2719_v59 = vadd.f32 %v712_v54, %v547_v14  ;;  %v625_v60 = vmul.f32 %v613_v19, %v601_v9  ;;  %v718_v61 = vmul.f32 %v706_v28, %v694_v25  ;;  %v651_v7 = vadd.f32 %v650_v13, %v649_v22 }
 0x1c5   : > { %v588_v48 = vmul.f32 %v576_v55, %v2535_v18  ;;  %v662_v3 = vsel %vm497_vm0, %v648_v33, 0.0  ;;  %v659_v21 = vsel %vm497_vm0, %v643_v53, 0.0  ;;  %v1320_v19 = vrot.slane %v2621_v41, 1 }
 0x1c6   : > { %1232 = vrot.lane.b32.xlu1 %v2719_v59, %s2079_s9  ;;  %v637_v52 = vmul.f32 %v625_v60, %v625_v60  ;;  %v2724_v16 = vadd.f32 %v718_v61, %v553_v4 }
 0x1c7   : > { %v612_v17 = vmul.f32 %v588_v48, %v2486_v51  ;;  %v693_v57 = vmul.f32 %v681_v47, %v588_v48  ;;  %v1323_v48 = vrot.slane %v2623_v44, 1  ;;  %v1332_v47 = vrot.slane %v2682_v62, 1 }
 0x1c8   : > { %v657_v8 = vsel %vm497_vm0, %v637_v52, 0.0 }
 0x1c9   : > { %v624_v18 = vmul.f32 %v612_v17, %v600_v49  ;;  %v717_v51 = vmul.f32 %v705_v56, %v693_v57  ;;  %v658_v10 = vadd.f32 %v657_v8, %v656_v58  ;;  %v1329_v49 = vrot.slane %v2661_v38, 1 }
 0x1ca   : > { %1244 = vrot.lane.b32.xlu1 %v2724_v16, %s2079_s9  ;;  %v1326_v57 = vrot.slane %v2701_v39, 1 }
 0x1cb   : > { %v636_v11 = vmul.f32 %v624_v18, %v624_v18  ;;  %v2734_v50 = vadd.f32 %v717_v51, %v552_v45  ;;  %v663_v14 = vsel %vm497_vm0, %v658_v10, 0.0  ;;  %v1321_v51 = vrot.slane %v2629_v35, 1 }
 0x1cc   : > { %v664_v22 = vadd.f32 %v663_v14, %v662_v3  ;;  %v1324_v10 = vrot.slane %v2646_v15, 1 }
 0x1cd   : > { %v652_v1 = vsel %vm497_vm0, %v636_v11, 0.0  ;;  %1242 = vrot.lane.b32.xlu0 %v2734_v50, %s2079_s9  ;;  %v1335_v52 = vrot.slane %v2734_v50, 1 }
 0x1ce   : > { %v653_v20 = vadd.f32 %v652_v1, %v651_v7  ;;  %v668_v5 = vadd.f32 %v666_v6, %v664_v22 }
 0x1d0   : > { %v660_v2 = vsel %vm497_vm0, %v653_v20, 0.0  ;;  %670 = vst.msk [vmem:[#allocation2 + $0x8] sm:$0xff] %vm497_vm0, %v668_v5 }
 0x1d1   : > { %v661_v24 = vadd.f32 %v660_v2, %v659_v21 }
 0x1d3   : > { %v667_v26 = vadd.f32 %v665_v40, %v661_v24 }
 0x1d5   : > { %669 = vst.msk [vmem:[#allocation2] sm:$0xff] %vm497_vm0, %v667_v26 }
 0x1dc   : > { %v1414_v9 = vld [vmem:[#allocation2] sm:$0xff] }
 0x1dd   : > { %v1416_v29 = vsel %vm497_vm0, %v1414_v9, 0.0  ;;  %v1353_v9 = vsub.f32 %v2646_v15, %v1324_v10 }
 0x1ec   : > { %1417 = vadd.xlane.f32.xlu0 %v1416_v29 }
 0x21d   : > { %v1223_v42 = vpop.permute.xlu0 %1222 }
 0x21e   : > { %v1258_v46 = vsub.f32 %v2621_v41, %v1223_v42 }
 0x220   : > { %v1270_v56 = vand.u32 2147483647, %v1258_v46 }
 0x221   : > { %v1225_v28 = vpop.permute.xlu0 %1224 }
 0x222   : > { %v1259_v55 = vsub.f32 %v2629_v35, %v1225_v28  ;;  %v1283_v6 = vsel %vm500_vm14, %v1270_v56, 0.0 }
 0x224   : > { %v1271_v60 = vand.u32 2147483647, %v1259_v55  ;;  %v1336_v55 = vrot.slane %v2724_v16, 1 }
 0x226   : > { %v1288_v22 = vsel %vm500_vm14, %v1271_v60, 0.0 }
 0x227   : > { %v1227_v43 = vpop.permute.xlu1 %1226 }
 0x228   : > { %v1260_v63 = vsub.f32 %v2623_v44, %v1227_v43 }
 0x22a   : > { %v1235_v37 = vpop.permute.xlu0 %1234  ;;  %v1272_v58 = vand.u32 2147483647, %v1260_v63 }
 0x22b   : > { %v1264_v17 = vsub.f32 %v2661_v38, %v1235_v37 }
 0x22c   : > { %v1229_v45 = vpop.permute.xlu1 %1228  ;;  %v1284_v1 = vsel %vm500_vm14, %v1272_v58, 0.0 }
 0x22d   : > { %v1261_v54 = vsub.f32 %v2646_v15, %v1229_v45  ;;  %v1276_v5 = vand.u32 2147483647, %v1264_v17 }
 0x22e   : > { %v1239_v33 = vpop.permute.xlu0 %1238 }
 0x22f   : > { %v1273_v61 = vand.u32 2147483647, %v1261_v54  ;;  %v1266_v18 = vsub.f32 %v2682_v62, %v1239_v33  ;;  %v1293_v42 = vsel %vm500_vm14, %v1276_v5, 0.0 }
 0x230   : > { %v1237_v13 = vpop.permute.xlu1 %1236 }
 0x231   : > { %v1289_v20 = vsel %vm500_vm14, %v1273_v61, 0.0  ;;  %v1265_v2 = vsub.f32 %v2673_v31, %v1237_v13  ;;  %v1278_v40 = vand.u32 2147483647, %v1266_v18 }
 0x232   : > { %v1290_v29 = vadd.f32 %v1289_v20, %v1288_v22 }
 0x233   : > { %v1277_v43 = vand.u32 2147483647, %v1265_v2  ;;  %v1294_v45 = vsel %vm500_vm14, %v1278_v40, 0.0 }
 0x234   : > { %v1241_v25 = vpop.permute.xlu1 %1240  ;;  %v1231_v3 = vpop.permute.xlu0 %1230  ;;  %v2806_v58 = vadd.f32 %v1294_v45, %v1293_v42 }
 0x235   : > { %v1267_v24 = vsub.f32 %v2691_v23, %v1241_v25  ;;  %v1262_v26 = vsub.f32 %v2701_v39, %v1231_v3 }
 0x237   : > { %v1279_v37 = vand.u32 2147483647, %v1267_v24  ;;  %v1274_v13 = vand.u32 2147483647, %v1262_v26 }
 0x238   : > { %v1233_v21 = vpop.permute.xlu1 %1232 }
 0x239   : > { %v1286_v61 = vsel %vm500_vm14, %v1274_v13, 0.0 }
 0x27b   : > { %v1719_v4 = vpop.f32.mrb[0].mxu1 }
 0x27c   : > { %v985_v36 = vpop.f32.mrb[1].mxu1  ;;  %vm1005_vm1 = vcmp.ne.f32.partialorder %v1719_v4, 0.0  ;;  %v1322_v4 = vsel %vm1319_vm5, %v1320_v19, %v1321_v51  ;;  %v1365_v19 = vand.u32 2147483647, %v1353_v9 }
 0x27d   : > { %vm1004_vm2 = vcmp.ne.f32.partialorder %v985_v36, 0.0  ;;  %v2766_v7 = vsel %vm1005_vm1, 1.0, %v2078_v0  ;;  %v1263_v36 = vsub.f32 %v2719_v59, %v1233_v21  ;;  %v1350_v28 = vsub.f32 %v2621_v41, %v1322_v4 }
 0x27e   : > { %v2769_v8 = vsel %vm1004_vm2, 1.0, %v2078_v0  ;;  %v1298_v41 = vsel %vm500_vm14, %v1277_v43, 0.0  ;;  %v1381_v3 = vsel %vm504_vm15, %v1365_v19, 0.0 }
 0x27f   : > { %v1722_v30 = vpop.f32.mrb[2].mxu1  ;;  %v1275_v63 = vand.u32 2147483647, %v1263_v36 }
 0x280   : > { %v995_v32 = vpop.f32.mrb[3].mxu1  ;;  %vm1007_vm3 = vcmp.ne.f32.partialorder %v1722_v30, 0.0  ;;  %v1325_v30 = vsel %vm1319_vm5, %v1323_v48, %v1324_v10  ;;  %v1362_v48 = vand.u32 2147483647, %v1350_v28  ;;  %v1243_v10 = vpop.permute.xlu0 %1242 }
 0x281   : > { %vm1006_vm4 = vcmp.ne.f32.partialorder %v995_v32, 0.0  ;;  %v2774_v11 = vsel %vm1007_vm3, 1.0, %v2078_v0  ;;  %v1330_v32 = vrot.slane %v2673_v31, 1  ;;  %v1352_v46 = vsub.f32 %v2623_v44, %v1325_v30 }
 0x282   : > { %v2777_v14 = vsel %vm1006_vm4, 1.0, %v2078_v0  ;;  %v1291_v18 = vsel %vm500_vm14, %v1275_v63, 0.0  ;;  %v1268_v26 = vsub.f32 %v2734_v50, %v1243_v10 }
 0x283   : > { %v1733_v34 = vpop.f32.mrb[4].mxu1  ;;  %v1331_v54 = vsel %vm1319_vm5, %v1329_v49, %v1330_v32  ;;  %v1357_v56 = vsub.f32 %v2673_v31, %v1330_v32  ;;  %v1364_v60 = vand.u32 2147483647, %v1352_v46  ;;  %v1245_v31 = vpop.permute.xlu1 %1244  ;;  %v1292_v24 = vadd.f32 %v1291_v18, %v1290_v29 }
 0x284   : > { %v1078_v12 = vpop.f32.mrb[5].mxu1  ;;  %v1356_v49 = vsub.f32 %v2661_v38, %v1331_v54  ;;  %v1374_v38 = vsel %vm497_vm0, %v1362_v48, 0.0  ;;  %v1269_v2 = vsub.f32 %v2724_v16, %v1245_v31  ;;  %v1280_v28 = vand.u32 2147483647, %v1268_v26 }
 0x285   : > { %1741 = vmatprep.mubr.msk.f32.mxu0 %vm497_vm0, %v1078_v12  ;;  %v1285_v12 = vadd.f32 %v1284_v1, %v1283_v6  ;;  %v1369_v6 = vand.u32 2147483647, %v1357_v56  ;;  %v1375_v21 = vsel %vm497_vm0, %v1364_v60, 0.0 }
 0x286   : > { %1742 = vmatmul.mubr.msk.f32.vlgmr.msra.gmra.mrb[4].mxu0 %vm497_vm0, %v1733_v34  ;;  %v1333_v34 = vrot.slane %v2691_v23, 1  ;;  %v1376_v32 = vadd.f32 %v1375_v21, %v1374_v38  ;;  %v1281_v29 = vand.u32 2147483647, %v1269_v2  ;;  %v1395_v2 = vld [vmem:[#allocation4] sm:$0xff] }
 0x287   : > { %v1736_v53 = vpop.f32.mrb[6].mxu1  ;;  %v1287_v5 = vadd.f32 %v1286_v61, %v1285_v12 }
 0x288   : > { %v1088_v27 = vpop.f32.mrb[7].mxu1  ;;  %v1359_v44 = vsub.f32 %v2691_v23, %v1333_v34 }
 0x289   : > { %1744 = vmatprep.mubr.msk.f32.mxu0 %vm497_vm0, %v1088_v27  ;;  %v1351_v27 = vsub.f32 %v2629_v35, %v1321_v51  ;;  %v1334_v35 = vsel %vm1319_vm5, %v1332_v47, %v1333_v34 }
 0x28a   : > { %1745 = vmatmul.mubr.msk.f32.gmra.mrb[6].mxu0 %vm497_vm0, %v1736_v53  ;;  %v1327_v53 = vrot.slane %v2719_v59, 1  ;;  %v1358_v47 = vsub.f32 %v2682_v62, %v1334_v35  ;;  %v1361_v62 = vsub.f32 %v2724_v16, %v1336_v55  ;;  %v1371_v1 = vand.u32 2147483647, %v1359_v44 }
 0x28b   : > { %v1363_v33 = vand.u32 2147483647, %v1351_v27  ;;  %v1296_v44 = vsel %vm500_vm14, %v1280_v28, 0.0  ;;  %v1418_v28 = vpop.xlane.xlu0 %1417 }
 0x28c   : > { %v1355_v15 = vsub.f32 %v2719_v59, %v1327_v53  ;;  %v1328_v25 = vsel %vm1319_vm5, %v1326_v57, %v1327_v53  ;;  %v1299_v59 = vsel %vm500_vm14, %v1279_v37, 0.0  ;;  %v1337_v57 = vsel %vm1319_vm5, %v1335_v52, %v1336_v55 }
 0x28d   : > { %v1354_v17 = vsub.f32 %v2701_v39, %v1328_v25  ;;  %v1380_v23 = vsel %vm504_vm15, %v1363_v33, 0.0  ;;  %v1360_v39 = vsub.f32 %v2734_v50, %v1337_v57  ;;  %v1368_v52 = vand.u32 2147483647, %v1356_v49 }
 0x28e   : > { %v1367_v51 = vand.u32 2147483647, %v1355_v15  ;;  %v1370_v22 = vand.u32 2147483647, %v1358_v47  ;;  %v1300_v20 = vadd.f32 %v1299_v59, %v1298_v41  ;;  %v1382_v4 = vadd.f32 %v1381_v3, %v1380_v23 }
 0x28f   : > { %v1366_v40 = vand.u32 2147483647, %v1354_v17  ;;  %v1373_v34 = vand.u32 2147483647, %v1361_v62  ;;  %v1390_v53 = vsel %vm504_vm15, %v1369_v6, 0.0  ;;  %v1391_v27 = vsel %vm504_vm15, %v1371_v1, 0.0 }
 0x290   : > { %v1383_v36 = vsel %vm504_vm15, %v1367_v51, 0.0  ;;  %v1372_v42 = vand.u32 2147483647, %v1360_v39  ;;  %v1385_v12 = vsel %vm497_vm0, %v1368_v52, 0.0  ;;  %v1386_v16 = vsel %vm497_vm0, %v1370_v22, 0.0 }
 0x291   : > { %v1377_v43 = vsel %vm497_vm0, %v1366_v40, 0.0  ;;  %v1392_v13 = vadd.f32 %v1391_v27, %v1390_v53  ;;  %v1384_v46 = vadd.f32 %v1383_v36, %v1382_v4  ;;  %v1393_v54 = vsel %vm504_vm15, %v1373_v34, 0.0  ;;  %v1415_v27 = vld [vmem:[#allocation2 + $0x8] sm:$0xff] }
 0x292   : > { %v1387_v35 = vadd.f32 %v1386_v16, %v1385_v12  ;;  %v1378_v33 = vadd.f32 %v1377_v43, %v1376_v32  ;;  %v1388_v25 = vsel %vm497_vm0, %v1372_v42, 0.0  ;;  %v1301_v41 = vsel %vm500_vm14, %v1281_v29, 0.0 }
 0x293   : > { %v1394_v49 = vadd.f32 %v1393_v54, %v1392_v13  ;;  %v1302_v57 = vadd.f32 %v1301_v41, %v1300_v20  ;;  %v1303_v20 = vld [vmem:[#allocation3] sm:$0xff]  ;;  %v1419_v16 = vsel %vm497_vm0, %v1415_v27, 0.0 }
 0x294   : > { %v1389_v17 = vadd.f32 %v1388_v25, %v1387_v35 }
 0x359   : > { %v1743_v30 = vpop.f32.mrb[4].mxu0 }
 0x35a   : > { %vm1195_vm6 = vcmp.ne.f32.partialorder %v1743_v30, 0.0  ;;  %v1175_v9 = vpop.f32.mrb[5].mxu0 }
 0x35b   : > { %v1199_v50 = vsel %vm1195_vm6, 1.0, %v2078_v0  ;;  %vm1194_vm7 = vcmp.ne.f32.partialorder %v1175_v9, 0.0 }
 0x35c   : > { %v1203_v45 = vsub.f32 1.0, %v1199_v50  ;;  %v1198_v37 = vsel %vm1194_vm7, 1.0, %v2078_v0 }
 0x35d   : > { %v1202_v63 = vsub.f32 1.0, %v1198_v37  ;;  %v1746_v55 = vpop.f32.mrb[6].mxu0 }
 0x35e   : > { %v1207_v15 = vsub.f32 %v2766_v7, %v1203_v45  ;;  %vm1197_vm8 = vcmp.ne.f32.partialorder %v1746_v55, 0.0  ;;  %v1185_v19 = vpop.f32.mrb[7].mxu0 }
 0x35f   : > { %v1206_v48 = vsub.f32 %v2769_v8, %v1202_v63  ;;  %v1201_v56 = vsel %vm1197_vm8, 1.0, %v2078_v0  ;;  %vm1196_vm9 = vcmp.ne.f32.partialorder %v1185_v19, 0.0  ;;  %v1297_v8 = vadd.f32 %v1296_v44, %v2806_v58 }
 0x360   : > { %v1205_v60 = vsub.f32 1.0, %v1201_v56  ;;  %v1200_v47 = vsel %vm1196_vm9, 1.0, %v2078_v0  ;;  %v1306_v59 = vmul.f32 %v1292_v24, %v1207_v15  ;;  %v1398_v7 = vmul.f32 %v1384_v46, %v1207_v15  ;;  %v1304_v0 = vld [vmem:[#allocation3 + $0x8] sm:$0xff] }
 0x361   : > { %v1204_v61 = vsub.f32 1.0, %v1200_v47  ;;  %v1305_v18 = vmul.f32 %v1287_v5, %v1206_v48  ;;  %v1397_v31 = vmul.f32 %v1378_v33, %v1206_v48 }
 0x362   : > { %v1209_v51 = vsub.f32 %v2774_v11, %v1205_v60  ;;  %v1312_v38 = vsel %vm500_vm14, %v1306_v59, 0.0  ;;  %v1404_v62 = vsel %vm504_vm15, %v1398_v7, 0.0  ;;  %v1396_v11 = vld [vmem:[#allocation4 + $0x8] sm:$0x7f] }
 0x363   : > { %v1208_v23 = vsub.f32 %v2777_v14, %v1204_v61  ;;  %v1309_v21 = vsel %vm500_vm14, %v1305_v18, 0.0  ;;  %v1401_v39 = vsel %vm497_vm0, %v1397_v31, 0.0 }
 0x364   : > { %v1308_v3 = vmul.f32 %v1302_v57, %v1209_v51  ;;  %v1400_v10 = vmul.f32 %v1394_v49, %v1209_v51 }
 0x365   : > { %v1307_v6 = vmul.f32 %v1297_v8, %v1208_v23  ;;  %v1399_v1 = vmul.f32 %v1389_v17, %v1208_v23 }
 0x366   : > { %v1313_v52 = vsel %vm500_vm14, %v1308_v3, 0.0  ;;  %v1405_v58 = vsel %vm504_vm15, %v1400_v10, 0.0 }
 0x367   : > { %v1314_v22 = vadd.f32 %v1313_v52, %v1312_v38  ;;  %v1406_v14 = vadd.f32 %v1405_v58, %v1404_v62  ;;  %v1310_v5 = vsel %vm500_vm14, %v1307_v6, 0.0  ;;  %v1402_v40 = vsel %vm497_vm0, %v1399_v1, 0.0 }
 0x368   : > { %v1311_v24 = vadd.f32 %v1310_v5, %v1309_v21  ;;  %v1403_v26 = vadd.f32 %v1402_v40, %v1401_v39 }
 0x369   : > { %v1316_v4 = vadd.f32 %v1314_v22, %v1304_v0  ;;  %v1408_v36 = vadd.f32 %v1406_v14, %v1396_v11 }
 0x36a   : > { %v1315_v30 = vadd.f32 %v1311_v24, %v1303_v20  ;;  %v1407_v32 = vadd.f32 %v1403_v26, %v1395_v2 }
 0x36b   : > { %1318 = vst.msk [vmem:[#allocation3 + $0x8] sm:$0xff] %vm500_vm14, %v1316_v4 }
 0x36c   : > { %1410 = vst.msk [vmem:[#allocation4 + $0x8] sm:$0x7f] %vm504_vm15, %v1408_v36 }
 0x36d   : > { %1317 = vst.msk [vmem:[#allocation3] sm:$0xff] %vm500_vm14, %v1315_v30 }
 0x36e   : > { %1409 = vst.msk [vmem:[#allocation4] sm:$0xff] %vm497_vm0, %v1407_v32 }
 0x372   : > { %v1431_v34 = vld [vmem:[#allocation3 + $0x8] sm:$0xff] }
 0x373   : > { %v1449_v53 = vld [vmem:[#allocation4 + $0x8] sm:$0x7f]  ;;  %v1435_v9 = vsel %vm500_vm14, %v1431_v34, 0.0 }
 0x374   : > { %v1453_v42 = vsel %vm504_vm15, %v1449_v53, 0.0  ;;  %1436 = vadd.xlane.f32.xlu1 %v1435_v9  ;;  %v1430_v12 = vld [vmem:[#allocation3] sm:$0xff] }
 0x375   : > { %1454 = vadd.xlane.f32.xlu0 %v1453_v42  ;;  %v1432_v29 = vsel %vm500_vm14, %v1430_v12, 0.0  ;;  %v1448_v50 = vld [vmem:[#allocation4] sm:$0xff] }
 0x376   : > { %v1450_v43 = vsel %vm497_vm0, %v1448_v50, 0.0 }
 0x378   : > { %1420 = vadd.xlane.f32.xlu1 %v1419_v16 }
 0x379   : > { %1433 = vadd.xlane.f32.xlu0 %v1432_v29 }
 0x37d   : > { %1451 = vadd.xlane.f32.xlu0 %v1450_v43 }
 0x401   : > { %v1437_v45 = vpop.xlane.xlu1 %1436 }
 0x402   : > { %v1455_v37 = vpop.xlane.xlu0 %1454 }
 0x403   : > { %v1456_v15 = vsel %vm1319_vm5, %v1455_v37, 0.0 }
 0x405   : > { %v1421_v13 = vpop.xlane.xlu1 %1420 }
 0x406   : > { %v1434_v46 = vpop.xlane.xlu0 %1433  ;;  %v1422_v63 = vadd.f32 %v1421_v13, %v1418_v28 }
 0x407   : > { %v1438_v55 = vadd.f32 %v1437_v45, %v1434_v46 }
 0x408   : > { %v1423_v54 = vrot.slane %v1422_v63, 4 }
 0x409   : > { %v1439_v35 = vrot.slane %v1438_v55, 4 }
 0x40a   : > { %v1452_v33 = vpop.xlane.xlu0 %1451  ;;  %v1424_v19 = vadd.f32 %v1423_v54, %v1422_v63 }
 0x40b   : > { %v1440_v25 = vadd.f32 %v1439_v35, %v1438_v55  ;;  %v1457_v41 = vadd.f32 %v1456_v15, %v1452_v33 }
 0x40c   : > { %v1425_v48 = vrot.slane %v1424_v19, 2 }
 0x40d   : > { %v1441_v56 = vrot.slane %v1440_v25, 2  ;;  %v1458_v44 = vrot.slane %v1457_v41, 4 }
 0x40e   : > { %v1426_v60 = vadd.f32 %v1425_v48, %v1424_v19 }
 0x40f   : > { %v1442_v49 = vadd.f32 %v1441_v56, %v1440_v25  ;;  %v1459_v47 = vadd.f32 %v1458_v44, %v1457_v41 }
 0x410   : > { %v1427_v59 = vrot.slane %v1426_v60, 1 }
 0x411   : > { %v1443_v7 = vrot.slane %v1442_v49, 1  ;;  %v1460_v61 = vrot.slane %v1459_v47, 2 }
 0x412   : > { %v1428_v18 = vadd.f32 %v1427_v59, %v1426_v60 }
 0x413   : > { %v1444_v17 = vadd.f32 %v1443_v7, %v1442_v49  ;;  %v1461_v57 = vadd.f32 %v1460_v61, %v1459_v47 }
 0x414   : > { %v1429_v3 = vmul.f32 0.00032552084, %v1428_v18 }
 0x415   : > { %v1445_v31 = vmul.f32 0.1, %v1444_v17  ;;  %v1462_v51 = vrot.slane %v1461_v57, 1 }
 0x417   : > { %v1446_v8 = vmul.f32 0.00034722223, %v1445_v31  ;;  %v1463_v23 = vadd.f32 %v1462_v51, %v1461_v57 }
 0x419   : > { %v1464_v10 = vmul.f32 0.1, %v1463_v23  ;;  %v1447_v38 = vadd.f32 %v1446_v8, %v1429_v3 }
 0x41b   : > { %v1465_v62 = vmul.f32 0.00034722223, %v1464_v10 }
 0x41d   : > { %v1466_v0 = vadd.f32 %v1465_v62, %v1447_v38 }
 0x41f   : > { %1467 = vst [vmem:[%s492_s22] sm:$0xff] %v1466_v0 }
 0x420 PF: > { %s26_s29 = sadd.s32 1, %s2069_s29   ;;  %s2927_s8 = sld [smem:[#allocation19_spill]] }
 0x421   : > { %p23_p5 = scmp.ge.s32.totalorder %s26_s29, 4   ;;  %s2928_s27 = sld [smem:[#allocation17_spill]] }
 0x422   : > { %s2929_s28 = sld [smem:[#allocation18_spill]]  ;;  %s2930_s24 = smov %s2053_s25 }
 0x423   : > { %s2931_s25 = smov %s2057_s26  ;;  %25 = sbr.rel (!%p23_p5) target bundleno = 13 (0xd), region = 144 }
 0x426   : > { %s2932_s26 = smov %s2927_s8 }
 0x42a   :  { %1487 = vsyncpa [#allocation6], 1 }
 0x42b   :  { %1489 = vsyncpa [#allocation6 + $0x1], 1 }
 0x42c   :  { %1490 = vsyncpa [#allocation8], 1 }
 0x42d   :  { %1492 = vsyncpa [#allocation8 + $0x1], 1 }
 0x42e   :  { %1493 = vsyncpa [#allocation11], 1 }
 0x42f   :  { %1495 = vsyncpa [#allocation11 + $0x1], 1 }

</bundles_post_ra>
